<compile_context>
chip_gen: v7x
topology: tpu7x:2x2x1
jax: 0.10.0
libtpu: 0.0.40
codegen_flags: <defaults>
</compile_context>

<pallas_src>
import jax
import jax.numpy as jnp
from jax.experimental import pallas as pl
from jax.experimental.pallas import tpu as pltpu


def _make_embedding_kernel(tile_s: int, num_segments: int, batch: int,
                           n_tiles: int, seq_len: int):
    """Builds the kernel with all loop bounds / extents baked in statically."""
    total_steps = n_tiles * batch

    def kernel(ids_smem, seg_ref, pos_ref, stab_ref, wtab_hbm, out_ref, gbuf, sems):
        # ids_smem:  (B*S,)      int32  -- SMEM scalar-prefetch (flattened token ids)
        # seg_ref:   (1, tS, 1)  int32  -- segment ids for this (seq tile, batch row)
        # pos_ref:   (tS, E)     f32    -- learned-position window for this seq tile
        # stab_ref:  (NS, E)     f32    -- segment embedding table (tiny, VMEM resident)
        # wtab_hbm:  (V, E)      f32    -- word embedding table, left in HBM
        # out_ref:   (1, tS, E)  f32
        # gbuf:      (2, tS, E)  f32    -- double-buffered gather landing buffer
        # sems:      (2,)        DMA semaphores (one per slot, shared by tS copies)
        t = pl.program_id(0)              # sequence-tile index (slow axis)
        b = pl.program_id(1)              # batch index (fast axis)
        step = t * batch + b              # linearized grid step
        slot = step % 2                   # double-buffer slot for this step

        def row_copy(tok, slot_idx, s):
            return pltpu.make_async_copy(
                wtab_hbm.at[pl.ds(tok, 1)],            # (1, E) row in HBM
                gbuf.at[slot_idx, pl.ds(s, 1), :],     # (1, E) row in VMEM
                sems.at[slot_idx],
            )

        def issue_gather(bb, tt, slot_idx):
            base = bb * seq_len + tt * tile_s
            for s in range(tile_s):
                row_copy(ids_smem[base + s], slot_idx, s).start()

        # ---- prime the pipeline on the very first grid step --------------------
        @pl.when(step == 0)
        def _():
            issue_gather(b, t, slot)

        # ---- prefetch the NEXT step's token rows into the other slot -----------
        @pl.when(step + 1 < total_steps)
        def _():
            nb = b + 1
            wrap = nb == batch
            nb = jnp.where(wrap, 0, nb)
            nt = jnp.where(wrap, t + 1, t)
            issue_gather(nb, nt, 1 - slot)

        # ---- position + segment addend on the VPU while the DMAs fly -----------
        sids = seg_ref[0]                                        # (tS, 1) int32
        rows = [stab_ref[k][None, :].astype(jnp.float32)
                for k in range(num_segments)]
        seg_add = rows[num_segments - 1]                         # select chain
        for k in range(num_segments - 2, -1, -1):
            seg_add = jnp.where(sids == k, rows[k], seg_add)
        addend = pos_ref[...].astype(jnp.float32) + seg_add      # (tS, E)

        # ---- wait for this step's rows (issued one grid step earlier) ----------
        for s in range(tile_s):
            row_copy(0, slot, s).wait()        # wait-only descriptor; src index unused

        out_ref[0] = (gbuf[slot] + addend).astype(out_ref.dtype)

    return kernel


def _pick_seq_tile(seq_len: int) -> int:
    # Largest "nice" tile (multiple of 8, capped at 128 tokens) that divides S;
    # otherwise fall back to the full sequence (a full-extent block always
    # satisfies the (8,128) layout rule).
    for cand in (128, 64, 32, 16, 8):
        if seq_len % cand == 0:
            return cand
    return seq_len


def embedding_forward(input_ids, segment_ids, word_emb, pos_emb, seg_emb, past_length=0):
    """Pallas equivalent of EmbeddingLayer.forward(input_ids, segment_ids, past_length)."""
    B, S = input_ids.shape
    V, E = word_emb.shape
    P, _ = pos_emb.shape
    NS, _ = seg_emb.shape
    past_length = int(past_length)   # must be static (host-side window slice below)
    # Bounds check host-side: in-kernel OOB reads would be silent / fatal.
    assert past_length + S <= P, "past_length + seq exceeds max_position_embeddings"

    tS = _pick_seq_tile(S)
    n_tiles = S // tS

    ids_flat = input_ids.astype(jnp.int32).reshape(-1)     # (B*S,) -> SMEM prefetch
    seg3 = segment_ids.astype(jnp.int32)[..., None]        # (B, S, 1)
    pos_win = pos_emb[past_length:past_length + S]         # (S, E), static slice

    kernel = _make_embedding_kernel(tS, NS, B, n_tiles, S)

    return pl.pallas_call(
        kernel,
        out_shape=jax.ShapeDtypeStruct((B, S, E), word_emb.dtype),
        grid_spec=pltpu.PrefetchScalarGridSpec(
            num_scalar_prefetch=1,                          # flattened ids -> SMEM
            grid=(n_tiles, B),                              # batch fastest -> pos reuse
            in_specs=[
                pl.BlockSpec((1, tS, 1), lambda t, b, ids: (b, t, 0)),  # segment ids
                pl.BlockSpec((tS, E), lambda t, b, ids: (t, 0)),        # pos window
                pl.BlockSpec((NS, E), lambda t, b, ids: (0, 0)),        # segment table
                pl.BlockSpec(memory_space=pl.ANY),                      # word table (HBM)
            ],
            out_specs=pl.BlockSpec((1, tS, E), lambda t, b, ids: (b, t, 0)),
            scratch_shapes=[
                pltpu.VMEM((2, tS, E), word_emb.dtype),     # double-buffered gather buf
                pltpu.SemaphoreType.DMA((2,)),              # one semaphore per slot
            ],
        ),
        compiler_params=pltpu.CompilerParams(
            # Cross-step scratch carry requires sequential grid traversal.
            dimension_semantics=("arbitrary", "arbitrary"),
            # 32 MiB fits all generations (v7x scoped default; explicit for v5e's 16 MiB).
            vmem_limit_bytes=32 * 1024 * 1024,
        ),
    )(ids_flat, seg3, pos_win, seg_emb, word_emb)


if __name__ == "__main__":
    # Module hyperparameters (small, consistent with the PyTorch __init__).
    vocab_size = 64
    embedding_size = 128          # multiple of 128 -> lane-dense output stores
    max_position_embeddings = 16
    num_segments = 2
    pad_token_id = 0
    batch, seq = 2, 8
    past_length = 0

    key = jax.random.PRNGKey(0)
    k_w, k_p, k_s, k_ids, k_seg = jax.random.split(key, 5)

    # Deterministic 'uniform' initializers (as in __reset_parameters with 'uniform').
    word_emb = jax.random.uniform(
        k_w, (vocab_size, embedding_size), jnp.float32, -0.1, 0.1
    )
    # padding_idx row of the word embeddings is zeroed.
    word_emb = word_emb.at[pad_token_id].set(0.0)
    pos_emb = jax.random.uniform(
        k_p, (max_position_embeddings, embedding_size), jnp.float32, -0.1, 0.1
    )
    seg_emb = jax.random.uniform(
        k_s, (num_segments, embedding_size), jnp.float32, -0.1, 0.1
    )

    input_ids = jax.random.randint(k_ids, (batch, seq), 0, vocab_size, jnp.int32)
    segment_ids = jax.random.randint(k_seg, (batch, seq), 0, num_segments, jnp.int32)

    out = embedding_forward(
        input_ids, segment_ids, word_emb, pos_emb, seg_emb, past_length=past_length
    )
    out = jax.block_until_ready(out)

    # Pure-JAX reference (semantics of EmbeddingLayer.forward).
    ref = (
        jnp.take(word_emb, input_ids, axis=0)
        + pos_emb[past_length:past_length + seq][None, :, :]
        + jnp.take(seg_emb, segment_ids, axis=0)
    )
    assert out.shape == (batch, seq, embedding_size)
    assert out.dtype == jnp.float32
    assert jnp.allclose(out, ref, atol=1e-5, rtol=1e-5)

    print("KERNEL_OK")
</pallas_src>

<mosaic_0001>
module attributes {stable_mosaic.version = 11 : i64} {
  func.func @kernel(%arg0: i32, %arg1: i32, %arg2: memref<16xi32, #tpu.memory_space<smem>>, %arg3: memref<1x8x1xi32, #tpu.memory_space<vmem>>, %arg4: memref<8x128xf32, #tpu.memory_space<vmem>>, %arg5: memref<2x128xf32, #tpu.memory_space<vmem>>, %arg6: memref<64x128xf32, #tpu.memory_space<any>>, %arg7: memref<1x8x128xf32, #tpu.memory_space<vmem>>, %arg8: memref<2x8x128xf32, #tpu.memory_space<vmem>>, %arg9: memref<2x!tpu.dma_semaphore, #tpu.memory_space<semaphore_mem>>) attributes {dimension_semantics = [#tpu.dimension_semantics<arbitrary>, #tpu.dimension_semantics<arbitrary>], iteration_bounds = array<i64: 1, 2>, scalar_prefetch = 1 : i64, scratch_operands = 2 : i64, tpu.core_type = #tpu.core_type<tc>, window_params = [{transform_indices = @transform_0, window_bounds = array<i64: 1, 8, 1>}, {transform_indices = @transform_1, window_bounds = array<i64: 8, 128>}, {pipeline_mode = #tpu.pipeline_mode<synchronous>, transform_indices = @transform_2, window_bounds = array<i64: 2, 128>}, {}, {transform_indices = @transform_4, window_bounds = array<i64: 1, 8, 128>}]} {
    %c2_i32 = arith.constant 2 : i32
    %0 = arith.muli %arg0, %c2_i32 : i32
    %1 = arith.addi %0, %arg1 : i32
    %c2_i32_0 = arith.constant 2 : i32
    %c0_i32 = arith.constant 0 : i32
    %2 = arith.cmpi eq, %c2_i32_0, %c0_i32 : i32
    %c1_i32 = arith.constant 1 : i32
    %3 = arith.select %2, %c1_i32, %c2_i32_0 : i32
    %4 = arith.remsi %1, %3 : i32
    %c0_i32_1 = arith.constant 0 : i32
    %5 = arith.cmpi ne, %4, %c0_i32_1 : i32
    %c0_i32_2 = arith.constant 0 : i32
    %6 = arith.cmpi slt, %4, %c0_i32_2 : i32
    %c0_i32_3 = arith.constant 0 : i32
    %7 = arith.cmpi slt, %3, %c0_i32_3 : i32
    %8 = arith.xori %6, %7 : i1
    %9 = arith.andi %8, %5 : i1
    %10 = arith.addi %4, %3 : i32
    %11 = arith.select %9, %10, %4 : i32
    %c0_i32_4 = arith.constant 0 : i32
    %12 = arith.cmpi eq, %1, %c0_i32_4 : i32
    %13 = arith.extui %12 : i1 to i32
    %c0_i32_5 = arith.constant 0 : i32
    %14 = arith.cmpi ne, %13, %c0_i32_5 : i32
    scf.if %14 {
      %c8_i32 = arith.constant 8 : i32
      %85 = arith.muli %arg1, %c8_i32 : i32
      %c8_i32_49 = arith.constant 8 : i32
      %86 = arith.muli %arg0, %c8_i32_49 : i32
      %87 = arith.addi %85, %86 : i32
      %c0_i32_50 = arith.constant 0 : i32
      %88 = arith.addi %87, %c0_i32_50 : i32
      %89 = arith.index_cast %88 : i32 to index
      %90 = memref.load %arg2[%89] : memref<16xi32, #tpu.memory_space<smem>>
      %c0_i32_51 = arith.constant 0 : i32
      %91 = tpu.memref_slice %arg6[%90, %c0_i32_51] : memref<64x128xf32, #tpu.memory_space<any>> -> memref<1x128xf32, #tpu.memory_space<any>>
      %c0_i32_52 = arith.constant 0 : i32
      %c0_i32_53 = arith.constant 0 : i32
      %92 = tpu.memref_slice %arg8[%11, %c0_i32_52, %c0_i32_53] : memref<2x8x128xf32, #tpu.memory_space<vmem>> -> memref<1x1x128xf32, #tpu.memory_space<vmem>>
      %93 = tpu.memref_squeeze %92 : memref<1x1x128xf32, #tpu.memory_space<vmem>> -> memref<1x128xf32, #tpu.memory_space<vmem>>
      %94 = tpu.memref_slice %arg9[%11] : memref<2x!tpu.dma_semaphore, #tpu.memory_space<semaphore_mem>> -> memref<1x!tpu.dma_semaphore, #tpu.memory_space<semaphore_mem>>
      %95 = tpu.memref_squeeze %94 : memref<1x!tpu.dma_semaphore, #tpu.memory_space<semaphore_mem>> -> memref<!tpu.dma_semaphore, #tpu.memory_space<semaphore_mem>>
      tpu.enqueue_dma source(%91 : memref<1x128xf32, #tpu.memory_space<any>>) target(%93 : memref<1x128xf32, #tpu.memory_space<vmem>>) target_semaphore(%95 : memref<!tpu.dma_semaphore, #tpu.memory_space<semaphore_mem>>)
      %c1_i32_54 = arith.constant 1 : i32
      %96 = arith.addi %87, %c1_i32_54 : i32
      %97 = arith.index_cast %96 : i32 to index
      %98 = memref.load %arg2[%97] : memref<16xi32, #tpu.memory_space<smem>>
      %c0_i32_55 = arith.constant 0 : i32
      %99 = tpu.memref_slice %arg6[%98, %c0_i32_55] : memref<64x128xf32, #tpu.memory_space<any>> -> memref<1x128xf32, #tpu.memory_space<any>>
      %c1_i32_56 = arith.constant 1 : i32
      %c0_i32_57 = arith.constant 0 : i32
      %100 = tpu.memref_slice %arg8[%11, %c1_i32_56, %c0_i32_57] : memref<2x8x128xf32, #tpu.memory_space<vmem>> -> memref<1x1x128xf32, #tpu.memory_space<vmem>>
      %101 = tpu.memref_squeeze %100 : memref<1x1x128xf32, #tpu.memory_space<vmem>> -> memref<1x128xf32, #tpu.memory_space<vmem>>
      %102 = tpu.memref_slice %arg9[%11] : memref<2x!tpu.dma_semaphore, #tpu.memory_space<semaphore_mem>> -> memref<1x!tpu.dma_semaphore, #tpu.memory_space<semaphore_mem>>
      %103 = tpu.memref_squeeze %102 : memref<1x!tpu.dma_semaphore, #tpu.memory_space<semaphore_mem>> -> memref<!tpu.dma_semaphore, #tpu.memory_space<semaphore_mem>>
      tpu.enqueue_dma source(%99 : memref<1x128xf32, #tpu.memory_space<any>>) target(%101 : memref<1x128xf32, #tpu.memory_space<vmem>>) target_semaphore(%103 : memref<!tpu.dma_semaphore, #tpu.memory_space<semaphore_mem>>)
      %c2_i32_58 = arith.constant 2 : i32
      %104 = arith.addi %87, %c2_i32_58 : i32
      %105 = arith.index_cast %104 : i32 to index
      %106 = memref.load %arg2[%105] : memref<16xi32, #tpu.memory_space<smem>>
      %c0_i32_59 = arith.constant 0 : i32
      %107 = tpu.memref_slice %arg6[%106, %c0_i32_59] : memref<64x128xf32, #tpu.memory_space<any>> -> memref<1x128xf32, #tpu.memory_space<any>>
      %c2_i32_60 = arith.constant 2 : i32
      %c0_i32_61 = arith.constant 0 : i32
      %108 = tpu.memref_slice %arg8[%11, %c2_i32_60, %c0_i32_61] : memref<2x8x128xf32, #tpu.memory_space<vmem>> -> memref<1x1x128xf32, #tpu.memory_space<vmem>>
      %109 = tpu.memref_squeeze %108 : memref<1x1x128xf32, #tpu.memory_space<vmem>> -> memref<1x128xf32, #tpu.memory_space<vmem>>
      %110 = tpu.memref_slice %arg9[%11] : memref<2x!tpu.dma_semaphore, #tpu.memory_space<semaphore_mem>> -> memref<1x!tpu.dma_semaphore, #tpu.memory_space<semaphore_mem>>
      %111 = tpu.memref_squeeze %110 : memref<1x!tpu.dma_semaphore, #tpu.memory_space<semaphore_mem>> -> memref<!tpu.dma_semaphore, #tpu.memory_space<semaphore_mem>>
      tpu.enqueue_dma source(%107 : memref<1x128xf32, #tpu.memory_space<any>>) target(%109 : memref<1x128xf32, #tpu.memory_space<vmem>>) target_semaphore(%111 : memref<!tpu.dma_semaphore, #tpu.memory_space<semaphore_mem>>)
      %c3_i32_62 = arith.constant 3 : i32
      %112 = arith.addi %87, %c3_i32_62 : i32
      %113 = arith.index_cast %112 : i32 to index
      %114 = memref.load %arg2[%113] : memref<16xi32, #tpu.memory_space<smem>>
      %c0_i32_63 = arith.constant 0 : i32
      %115 = tpu.memref_slice %arg6[%114, %c0_i32_63] : memref<64x128xf32, #tpu.memory_space<any>> -> memref<1x128xf32, #tpu.memory_space<any>>
      %c3_i32_64 = arith.constant 3 : i32
      %c0_i32_65 = arith.constant 0 : i32
      %116 = tpu.memref_slice %arg8[%11, %c3_i32_64, %c0_i32_65] : memref<2x8x128xf32, #tpu.memory_space<vmem>> -> memref<1x1x128xf32, #tpu.memory_space<vmem>>
      %117 = tpu.memref_squeeze %116 : memref<1x1x128xf32, #tpu.memory_space<vmem>> -> memref<1x128xf32, #tpu.memory_space<vmem>>
      %118 = tpu.memref_slice %arg9[%11] : memref<2x!tpu.dma_semaphore, #tpu.memory_space<semaphore_mem>> -> memref<1x!tpu.dma_semaphore, #tpu.memory_space<semaphore_mem>>
      %119 = tpu.memref_squeeze %118 : memref<1x!tpu.dma_semaphore, #tpu.memory_space<semaphore_mem>> -> memref<!tpu.dma_semaphore, #tpu.memory_space<semaphore_mem>>
      tpu.enqueue_dma source(%115 : memref<1x128xf32, #tpu.memory_space<any>>) target(%117 : memref<1x128xf32, #tpu.memory_space<vmem>>) target_semaphore(%119 : memref<!tpu.dma_semaphore, #tpu.memory_space<semaphore_mem>>)
      %c4_i32_66 = arith.constant 4 : i32
      %120 = arith.addi %87, %c4_i32_66 : i32
      %121 = arith.index_cast %120 : i32 to index
      %122 = memref.load %arg2[%121] : memref<16xi32, #tpu.memory_space<smem>>
      %c0_i32_67 = arith.constant 0 : i32
      %123 = tpu.memref_slice %arg6[%122, %c0_i32_67] : memref<64x128xf32, #tpu.memory_space<any>> -> memref<1x128xf32, #tpu.memory_space<any>>
      %c4_i32_68 = arith.constant 4 : i32
      %c0_i32_69 = arith.constant 0 : i32
      %124 = tpu.memref_slice %arg8[%11, %c4_i32_68, %c0_i32_69] : memref<2x8x128xf32, #tpu.memory_space<vmem>> -> memref<1x1x128xf32, #tpu.memory_space<vmem>>
      %125 = tpu.memref_squeeze %124 : memref<1x1x128xf32, #tpu.memory_space<vmem>> -> memref<1x128xf32, #tpu.memory_space<vmem>>
      %126 = tpu.memref_slice %arg9[%11] : memref<2x!tpu.dma_semaphore, #tpu.memory_space<semaphore_mem>> -> memref<1x!tpu.dma_semaphore, #tpu.memory_space<semaphore_mem>>
      %127 = tpu.memref_squeeze %126 : memref<1x!tpu.dma_semaphore, #tpu.memory_space<semaphore_mem>> -> memref<!tpu.dma_semaphore, #tpu.memory_space<semaphore_mem>>
      tpu.enqueue_dma source(%123 : memref<1x128xf32, #tpu.memory_space<any>>) target(%125 : memref<1x128xf32, #tpu.memory_space<vmem>>) target_semaphore(%127 : memref<!tpu.dma_semaphore, #tpu.memory_space<semaphore_mem>>)
      %c5_i32_70 = arith.constant 5 : i32
      %128 = arith.addi %87, %c5_i32_70 : i32
      %129 = arith.index_cast %128 : i32 to index
      %130 = memref.load %arg2[%129] : memref<16xi32, #tpu.memory_space<smem>>
      %c0_i32_71 = arith.constant 0 : i32
      %131 = tpu.memref_slice %arg6[%130, %c0_i32_71] : memref<64x128xf32, #tpu.memory_space<any>> -> memref<1x128xf32, #tpu.memory_space<any>>
      %c5_i32_72 = arith.constant 5 : i32
      %c0_i32_73 = arith.constant 0 : i32
      %132 = tpu.memref_slice %arg8[%11, %c5_i32_72, %c0_i32_73] : memref<2x8x128xf32, #tpu.memory_space<vmem>> -> memref<1x1x128xf32, #tpu.memory_space<vmem>>
      %133 = tpu.memref_squeeze %132 : memref<1x1x128xf32, #tpu.memory_space<vmem>> -> memref<1x128xf32, #tpu.memory_space<vmem>>
      %134 = tpu.memref_slice %arg9[%11] : memref<2x!tpu.dma_semaphore, #tpu.memory_space<semaphore_mem>> -> memref<1x!tpu.dma_semaphore, #tpu.memory_space<semaphore_mem>>
      %135 = tpu.memref_squeeze %134 : memref<1x!tpu.dma_semaphore, #tpu.memory_space<semaphore_mem>> -> memref<!tpu.dma_semaphore, #tpu.memory_space<semaphore_mem>>
      tpu.enqueue_dma source(%131 : memref<1x128xf32, #tpu.memory_space<any>>) target(%133 : memref<1x128xf32, #tpu.memory_space<vmem>>) target_semaphore(%135 : memref<!tpu.dma_semaphore, #tpu.memory_space<semaphore_mem>>)
      %c6_i32_74 = arith.constant 6 : i32
      %136 = arith.addi %87, %c6_i32_74 : i32
      %137 = arith.index_cast %136 : i32 to index
      %138 = memref.load %arg2[%137] : memref<16xi32, #tpu.memory_space<smem>>
      %c0_i32_75 = arith.constant 0 : i32
      %139 = tpu.memref_slice %arg6[%138, %c0_i32_75] : memref<64x128xf32, #tpu.memory_space<any>> -> memref<1x128xf32, #tpu.memory_space<any>>
      %c6_i32_76 = arith.constant 6 : i32
      %c0_i32_77 = arith.constant 0 : i32
      %140 = tpu.memref_slice %arg8[%11, %c6_i32_76, %c0_i32_77] : memref<2x8x128xf32, #tpu.memory_space<vmem>> -> memref<1x1x128xf32, #tpu.memory_space<vmem>>
      %141 = tpu.memref_squeeze %140 : memref<1x1x128xf32, #tpu.memory_space<vmem>> -> memref<1x128xf32, #tpu.memory_space<vmem>>
      %142 = tpu.memref_slice %arg9[%11] : memref<2x!tpu.dma_semaphore, #tpu.memory_space<semaphore_mem>> -> memref<1x!tpu.dma_semaphore, #tpu.memory_space<semaphore_mem>>
      %143 = tpu.memref_squeeze %142 : memref<1x!tpu.dma_semaphore, #tpu.memory_space<semaphore_mem>> -> memref<!tpu.dma_semaphore, #tpu.memory_space<semaphore_mem>>
      tpu.enqueue_dma source(%139 : memref<1x128xf32, #tpu.memory_space<any>>) target(%141 : memref<1x128xf32, #tpu.memory_space<vmem>>) target_semaphore(%143 : memref<!tpu.dma_semaphore, #tpu.memory_space<semaphore_mem>>)
      %c7_i32_78 = arith.constant 7 : i32
      %144 = arith.addi %87, %c7_i32_78 : i32
      %145 = arith.index_cast %144 : i32 to index
      %146 = memref.load %arg2[%145] : memref<16xi32, #tpu.memory_space<smem>>
      %c0_i32_79 = arith.constant 0 : i32
      %147 = tpu.memref_slice %arg6[%146, %c0_i32_79] : memref<64x128xf32, #tpu.memory_space<any>> -> memref<1x128xf32, #tpu.memory_space<any>>
      %c7_i32_80 = arith.constant 7 : i32
      %c0_i32_81 = arith.constant 0 : i32
      %148 = tpu.memref_slice %arg8[%11, %c7_i32_80, %c0_i32_81] : memref<2x8x128xf32, #tpu.memory_space<vmem>> -> memref<1x1x128xf32, #tpu.memory_space<vmem>>
      %149 = tpu.memref_squeeze %148 : memref<1x1x128xf32, #tpu.memory_space<vmem>> -> memref<1x128xf32, #tpu.memory_space<vmem>>
      %150 = tpu.memref_slice %arg9[%11] : memref<2x!tpu.dma_semaphore, #tpu.memory_space<semaphore_mem>> -> memref<1x!tpu.dma_semaphore, #tpu.memory_space<semaphore_mem>>
      %151 = tpu.memref_squeeze %150 : memref<1x!tpu.dma_semaphore, #tpu.memory_space<semaphore_mem>> -> memref<!tpu.dma_semaphore, #tpu.memory_space<semaphore_mem>>
      tpu.enqueue_dma source(%147 : memref<1x128xf32, #tpu.memory_space<any>>) target(%149 : memref<1x128xf32, #tpu.memory_space<vmem>>) target_semaphore(%151 : memref<!tpu.dma_semaphore, #tpu.memory_space<semaphore_mem>>)
    } else {
    }
    %c1_i32_6 = arith.constant 1 : i32
    %15 = arith.addi %1, %c1_i32_6 : i32
    %c2_i32_7 = arith.constant 2 : i32
    %16 = arith.cmpi slt, %15, %c2_i32_7 : i32
    %17 = arith.extui %16 : i1 to i32
    %c0_i32_8 = arith.constant 0 : i32
    %18 = arith.cmpi ne, %17, %c0_i32_8 : i32
    scf.if %18 {
      %c1_i32_49 = arith.constant 1 : i32
      %85 = arith.addi %arg1, %c1_i32_49 : i32
      %c2_i32_50 = arith.constant 2 : i32
      %86 = arith.cmpi eq, %85, %c2_i32_50 : i32
      %c0_i32_51 = arith.constant 0 : i32
      %87 = arith.select %86, %c0_i32_51, %85 : i32
      %c1_i32_52 = arith.constant 1 : i32
      %88 = arith.addi %arg0, %c1_i32_52 : i32
      %89 = arith.select %86, %88, %arg0 : i32
      %c1_i32_53 = arith.constant 1 : i32
      %90 = arith.subi %c1_i32_53, %11 : i32
      %c8_i32 = arith.constant 8 : i32
      %91 = arith.muli %87, %c8_i32 : i32
      %c8_i32_54 = arith.constant 8 : i32
      %92 = arith.muli %89, %c8_i32_54 : i32
      %93 = arith.addi %91, %92 : i32
      %c0_i32_55 = arith.constant 0 : i32
      %94 = arith.addi %93, %c0_i32_55 : i32
      %95 = arith.index_cast %94 : i32 to index
      %96 = memref.load %arg2[%95] : memref<16xi32, #tpu.memory_space<smem>>
      %c0_i32_56 = arith.constant 0 : i32
      %97 = tpu.memref_slice %arg6[%96, %c0_i32_56] : memref<64x128xf32, #tpu.memory_space<any>> -> memref<1x128xf32, #tpu.memory_space<any>>
      %c0_i32_57 = arith.constant 0 : i32
      %c0_i32_58 = arith.constant 0 : i32
      %98 = tpu.memref_slice %arg8[%90, %c0_i32_57, %c0_i32_58] : memref<2x8x128xf32, #tpu.memory_space<vmem>> -> memref<1x1x128xf32, #tpu.memory_space<vmem>>
      %99 = tpu.memref_squeeze %98 : memref<1x1x128xf32, #tpu.memory_space<vmem>> -> memref<1x128xf32, #tpu.memory_space<vmem>>
      %100 = tpu.memref_slice %arg9[%90] : memref<2x!tpu.dma_semaphore, #tpu.memory_space<semaphore_mem>> -> memref<1x!tpu.dma_semaphore, #tpu.memory_space<semaphore_mem>>
      %101 = tpu.memref_squeeze %100 : memref<1x!tpu.dma_semaphore, #tpu.memory_space<semaphore_mem>> -> memref<!tpu.dma_semaphore, #tpu.memory_space<semaphore_mem>>
      tpu.enqueue_dma source(%97 : memref<1x128xf32, #tpu.memory_space<any>>) target(%99 : memref<1x128xf32, #tpu.memory_space<vmem>>) target_semaphore(%101 : memref<!tpu.dma_semaphore, #tpu.memory_space<semaphore_mem>>)
      %c1_i32_59 = arith.constant 1 : i32
      %102 = arith.addi %93, %c1_i32_59 : i32
      %103 = arith.index_cast %102 : i32 to index
      %104 = memref.load %arg2[%103] : memref<16xi32, #tpu.memory_space<smem>>
      %c0_i32_60 = arith.constant 0 : i32
      %105 = tpu.memref_slice %arg6[%104, %c0_i32_60] : memref<64x128xf32, #tpu.memory_space<any>> -> memref<1x128xf32, #tpu.memory_space<any>>
      %c1_i32_61 = arith.constant 1 : i32
      %c0_i32_62 = arith.constant 0 : i32
      %106 = tpu.memref_slice %arg8[%90, %c1_i32_61, %c0_i32_62] : memref<2x8x128xf32, #tpu.memory_space<vmem>> -> memref<1x1x128xf32, #tpu.memory_space<vmem>>
      %107 = tpu.memref_squeeze %106 : memref<1x1x128xf32, #tpu.memory_space<vmem>> -> memref<1x128xf32, #tpu.memory_space<vmem>>
      %108 = tpu.memref_slice %arg9[%90] : memref<2x!tpu.dma_semaphore, #tpu.memory_space<semaphore_mem>> -> memref<1x!tpu.dma_semaphore, #tpu.memory_space<semaphore_mem>>
      %109 = tpu.memref_squeeze %108 : memref<1x!tpu.dma_semaphore, #tpu.memory_space<semaphore_mem>> -> memref<!tpu.dma_semaphore, #tpu.memory_space<semaphore_mem>>
      tpu.enqueue_dma source(%105 : memref<1x128xf32, #tpu.memory_space<any>>) target(%107 : memref<1x128xf32, #tpu.memory_space<vmem>>) target_semaphore(%109 : memref<!tpu.dma_semaphore, #tpu.memory_space<semaphore_mem>>)
      %c2_i32_63 = arith.constant 2 : i32
      %110 = arith.addi %93, %c2_i32_63 : i32
      %111 = arith.index_cast %110 : i32 to index
      %112 = memref.load %arg2[%111] : memref<16xi32, #tpu.memory_space<smem>>
      %c0_i32_64 = arith.constant 0 : i32
      %113 = tpu.memref_slice %arg6[%112, %c0_i32_64] : memref<64x128xf32, #tpu.memory_space<any>> -> memref<1x128xf32, #tpu.memory_space<any>>
      %c2_i32_65 = arith.constant 2 : i32
      %c0_i32_66 = arith.constant 0 : i32
      %114 = tpu.memref_slice %arg8[%90, %c2_i32_65, %c0_i32_66] : memref<2x8x128xf32, #tpu.memory_space<vmem>> -> memref<1x1x128xf32, #tpu.memory_space<vmem>>
      %115 = tpu.memref_squeeze %114 : memref<1x1x128xf32, #tpu.memory_space<vmem>> -> memref<1x128xf32, #tpu.memory_space<vmem>>
      %116 = tpu.memref_slice %arg9[%90] : memref<2x!tpu.dma_semaphore, #tpu.memory_space<semaphore_mem>> -> memref<1x!tpu.dma_semaphore, #tpu.memory_space<semaphore_mem>>
      %117 = tpu.memref_squeeze %116 : memref<1x!tpu.dma_semaphore, #tpu.memory_space<semaphore_mem>> -> memref<!tpu.dma_semaphore, #tpu.memory_space<semaphore_mem>>
      tpu.enqueue_dma source(%113 : memref<1x128xf32, #tpu.memory_space<any>>) target(%115 : memref<1x128xf32, #tpu.memory_space<vmem>>) target_semaphore(%117 : memref<!tpu.dma_semaphore, #tpu.memory_space<semaphore_mem>>)
      %c3_i32_67 = arith.constant 3 : i32
      %118 = arith.addi %93, %c3_i32_67 : i32
      %119 = arith.index_cast %118 : i32 to index
      %120 = memref.load %arg2[%119] : memref<16xi32, #tpu.memory_space<smem>>
      %c0_i32_68 = arith.constant 0 : i32
      %121 = tpu.memref_slice %arg6[%120, %c0_i32_68] : memref<64x128xf32, #tpu.memory_space<any>> -> memref<1x128xf32, #tpu.memory_space<any>>
      %c3_i32_69 = arith.constant 3 : i32
      %c0_i32_70 = arith.constant 0 : i32
      %122 = tpu.memref_slice %arg8[%90, %c3_i32_69, %c0_i32_70] : memref<2x8x128xf32, #tpu.memory_space<vmem>> -> memref<1x1x128xf32, #tpu.memory_space<vmem>>
      %123 = tpu.memref_squeeze %122 : memref<1x1x128xf32, #tpu.memory_space<vmem>> -> memref<1x128xf32, #tpu.memory_space<vmem>>
      %124 = tpu.memref_slice %arg9[%90] : memref<2x!tpu.dma_semaphore, #tpu.memory_space<semaphore_mem>> -> memref<1x!tpu.dma_semaphore, #tpu.memory_space<semaphore_mem>>
      %125 = tpu.memref_squeeze %124 : memref<1x!tpu.dma_semaphore, #tpu.memory_space<semaphore_mem>> -> memref<!tpu.dma_semaphore, #tpu.memory_space<semaphore_mem>>
      tpu.enqueue_dma source(%121 : memref<1x128xf32, #tpu.memory_space<any>>) target(%123 : memref<1x128xf32, #tpu.memory_space<vmem>>) target_semaphore(%125 : memref<!tpu.dma_semaphore, #tpu.memory_space<semaphore_mem>>)
      %c4_i32_71 = arith.constant 4 : i32
      %126 = arith.addi %93, %c4_i32_71 : i32
      %127 = arith.index_cast %126 : i32 to index
      %128 = memref.load %arg2[%127] : memref<16xi32, #tpu.memory_space<smem>>
      %c0_i32_72 = arith.constant 0 : i32
      %129 = tpu.memref_slice %arg6[%128, %c0_i32_72] : memref<64x128xf32, #tpu.memory_space<any>> -> memref<1x128xf32, #tpu.memory_space<any>>
      %c4_i32_73 = arith.constant 4 : i32
      %c0_i32_74 = arith.constant 0 : i32
      %130 = tpu.memref_slice %arg8[%90, %c4_i32_73, %c0_i32_74] : memref<2x8x128xf32, #tpu.memory_space<vmem>> -> memref<1x1x128xf32, #tpu.memory_space<vmem>>
      %131 = tpu.memref_squeeze %130 : memref<1x1x128xf32, #tpu.memory_space<vmem>> -> memref<1x128xf32, #tpu.memory_space<vmem>>
      %132 = tpu.memref_slice %arg9[%90] : memref<2x!tpu.dma_semaphore, #tpu.memory_space<semaphore_mem>> -> memref<1x!tpu.dma_semaphore, #tpu.memory_space<semaphore_mem>>
      %133 = tpu.memref_squeeze %132 : memref<1x!tpu.dma_semaphore, #tpu.memory_space<semaphore_mem>> -> memref<!tpu.dma_semaphore, #tpu.memory_space<semaphore_mem>>
      tpu.enqueue_dma source(%129 : memref<1x128xf32, #tpu.memory_space<any>>) target(%131 : memref<1x128xf32, #tpu.memory_space<vmem>>) target_semaphore(%133 : memref<!tpu.dma_semaphore, #tpu.memory_space<semaphore_mem>>)
      %c5_i32_75 = arith.constant 5 : i32
      %134 = arith.addi %93, %c5_i32_75 : i32
      %135 = arith.index_cast %134 : i32 to index
      %136 = memref.load %arg2[%135] : memref<16xi32, #tpu.memory_space<smem>>
      %c0_i32_76 = arith.constant 0 : i32
      %137 = tpu.memref_slice %arg6[%136, %c0_i32_76] : memref<64x128xf32, #tpu.memory_space<any>> -> memref<1x128xf32, #tpu.memory_space<any>>
      %c5_i32_77 = arith.constant 5 : i32
      %c0_i32_78 = arith.constant 0 : i32
      %138 = tpu.memref_slice %arg8[%90, %c5_i32_77, %c0_i32_78] : memref<2x8x128xf32, #tpu.memory_space<vmem>> -> memref<1x1x128xf32, #tpu.memory_space<vmem>>
      %139 = tpu.memref_squeeze %138 : memref<1x1x128xf32, #tpu.memory_space<vmem>> -> memref<1x128xf32, #tpu.memory_space<vmem>>
      %140 = tpu.memref_slice %arg9[%90] : memref<2x!tpu.dma_semaphore, #tpu.memory_space<semaphore_mem>> -> memref<1x!tpu.dma_semaphore, #tpu.memory_space<semaphore_mem>>
      %141 = tpu.memref_squeeze %140 : memref<1x!tpu.dma_semaphore, #tpu.memory_space<semaphore_mem>> -> memref<!tpu.dma_semaphore, #tpu.memory_space<semaphore_mem>>
      tpu.enqueue_dma source(%137 : memref<1x128xf32, #tpu.memory_space<any>>) target(%139 : memref<1x128xf32, #tpu.memory_space<vmem>>) target_semaphore(%141 : memref<!tpu.dma_semaphore, #tpu.memory_space<semaphore_mem>>)
      %c6_i32_79 = arith.constant 6 : i32
      %142 = arith.addi %93, %c6_i32_79 : i32
      %143 = arith.index_cast %142 : i32 to index
      %144 = memref.load %arg2[%143] : memref<16xi32, #tpu.memory_space<smem>>
      %c0_i32_80 = arith.constant 0 : i32
      %145 = tpu.memref_slice %arg6[%144, %c0_i32_80] : memref<64x128xf32, #tpu.memory_space<any>> -> memref<1x128xf32, #tpu.memory_space<any>>
      %c6_i32_81 = arith.constant 6 : i32
      %c0_i32_82 = arith.constant 0 : i32
      %146 = tpu.memref_slice %arg8[%90, %c6_i32_81, %c0_i32_82] : memref<2x8x128xf32, #tpu.memory_space<vmem>> -> memref<1x1x128xf32, #tpu.memory_space<vmem>>
      %147 = tpu.memref_squeeze %146 : memref<1x1x128xf32, #tpu.memory_space<vmem>> -> memref<1x128xf32, #tpu.memory_space<vmem>>
      %148 = tpu.memref_slice %arg9[%90] : memref<2x!tpu.dma_semaphore, #tpu.memory_space<semaphore_mem>> -> memref<1x!tpu.dma_semaphore, #tpu.memory_space<semaphore_mem>>
      %149 = tpu.memref_squeeze %148 : memref<1x!tpu.dma_semaphore, #tpu.memory_space<semaphore_mem>> -> memref<!tpu.dma_semaphore, #tpu.memory_space<semaphore_mem>>
      tpu.enqueue_dma source(%145 : memref<1x128xf32, #tpu.memory_space<any>>) target(%147 : memref<1x128xf32, #tpu.memory_space<vmem>>) target_semaphore(%149 : memref<!tpu.dma_semaphore, #tpu.memory_space<semaphore_mem>>)
      %c7_i32_83 = arith.constant 7 : i32
      %150 = arith.addi %93, %c7_i32_83 : i32
      %151 = arith.index_cast %150 : i32 to index
      %152 = memref.load %arg2[%151] : memref<16xi32, #tpu.memory_space<smem>>
      %c0_i32_84 = arith.constant 0 : i32
      %153 = tpu.memref_slice %arg6[%152, %c0_i32_84] : memref<64x128xf32, #tpu.memory_space<any>> -> memref<1x128xf32, #tpu.memory_space<any>>
      %c7_i32_85 = arith.constant 7 : i32
      %c0_i32_86 = arith.constant 0 : i32
      %154 = tpu.memref_slice %arg8[%90, %c7_i32_85, %c0_i32_86] : memref<2x8x128xf32, #tpu.memory_space<vmem>> -> memref<1x1x128xf32, #tpu.memory_space<vmem>>
      %155 = tpu.memref_squeeze %154 : memref<1x1x128xf32, #tpu.memory_space<vmem>> -> memref<1x128xf32, #tpu.memory_space<vmem>>
      %156 = tpu.memref_slice %arg9[%90] : memref<2x!tpu.dma_semaphore, #tpu.memory_space<semaphore_mem>> -> memref<1x!tpu.dma_semaphore, #tpu.memory_space<semaphore_mem>>
      %157 = tpu.memref_squeeze %156 : memref<1x!tpu.dma_semaphore, #tpu.memory_space<semaphore_mem>> -> memref<!tpu.dma_semaphore, #tpu.memory_space<semaphore_mem>>
      tpu.enqueue_dma source(%153 : memref<1x128xf32, #tpu.memory_space<any>>) target(%155 : memref<1x128xf32, #tpu.memory_space<vmem>>) target_semaphore(%157 : memref<!tpu.dma_semaphore, #tpu.memory_space<semaphore_mem>>)
    } else {
    }
    %c0 = arith.constant 0 : index
    %c0_9 = arith.constant 0 : index
    %c0_10 = arith.constant 0 : index
    %19 = vector.load %arg3[%c0, %c0_9, %c0_10] : memref<1x8x1xi32, #tpu.memory_space<vmem>>, vector<1x8x1xi32>
    %20 = vector.shape_cast %19 : vector<1x8x1xi32> to vector<8x1xi32>
    %c0_11 = arith.constant 0 : index
    %c0_12 = arith.constant 0 : index
    %21 = vector.load %arg5[%c0_11, %c0_12] : memref<2x128xf32, #tpu.memory_space<vmem>>, vector<1x128xf32>
    %22 = vector.shape_cast %21 : vector<1x128xf32> to vector<128xf32>
    %23 = vector.shape_cast %22 : vector<128xf32> to vector<1x128xf32>
    %c1 = arith.constant 1 : index
    %c0_13 = arith.constant 0 : index
    %24 = vector.load %arg5[%c1, %c0_13] : memref<2x128xf32, #tpu.memory_space<vmem>>, vector<1x128xf32>
    %25 = vector.shape_cast %24 : vector<1x128xf32> to vector<128xf32>
    %26 = vector.shape_cast %25 : vector<128xf32> to vector<1x128xf32>
    %c0_i32_14 = arith.constant 0 : i32
    %27 = vector.broadcast %c0_i32_14 : i32 to vector<8x1xi32>
    %28 = arith.cmpi eq, %20, %27 : vector<8x1xi32>
    %29 = vector.shape_cast %28 : vector<8x1xi1> to vector<8x1xi1>
    %30 = vector.broadcast %29 : vector<8x1xi1> to vector<8x128xi1>
    %31 = vector.shape_cast %23 : vector<1x128xf32> to vector<1x128xf32>
    %32 = vector.broadcast %31 : vector<1x128xf32> to vector<8x128xf32>
    %33 = vector.shape_cast %26 : vector<1x128xf32> to vector<1x128xf32>
    %34 = vector.broadcast %33 : vector<1x128xf32> to vector<8x128xf32>
    %35 = arith.select %30, %32, %34 : vector<8x128xi1>, vector<8x128xf32>
    %c0_15 = arith.constant 0 : index
    %c0_16 = arith.constant 0 : index
    %36 = vector.load %arg4[%c0_15, %c0_16] : memref<8x128xf32, #tpu.memory_space<vmem>>, vector<8x128xf32>
    %37 = arith.addf %36, %35 : vector<8x128xf32>
    %c0_i32_17 = arith.constant 0 : i32
    %c0_i32_18 = arith.constant 0 : i32
    %38 = tpu.memref_slice %arg6[%c0_i32_17, %c0_i32_18] : memref<64x128xf32, #tpu.memory_space<any>> -> memref<1x128xf32, #tpu.memory_space<any>>
    %c0_i32_19 = arith.constant 0 : i32
    %c0_i32_20 = arith.constant 0 : i32
    %39 = tpu.memref_slice %arg8[%11, %c0_i32_19, %c0_i32_20] : memref<2x8x128xf32, #tpu.memory_space<vmem>> -> memref<1x1x128xf32, #tpu.memory_space<vmem>>
    %40 = tpu.memref_squeeze %39 : memref<1x1x128xf32, #tpu.memory_space<vmem>> -> memref<1x128xf32, #tpu.memory_space<vmem>>
    %41 = tpu.memref_slice %arg9[%11] : memref<2x!tpu.dma_semaphore, #tpu.memory_space<semaphore_mem>> -> memref<1x!tpu.dma_semaphore, #tpu.memory_space<semaphore_mem>>
    %42 = tpu.memref_squeeze %41 : memref<1x!tpu.dma_semaphore, #tpu.memory_space<semaphore_mem>> -> memref<!tpu.dma_semaphore, #tpu.memory_space<semaphore_mem>>
    tpu.wait_dma2 semaphore(%42 : memref<!tpu.dma_semaphore, #tpu.memory_space<semaphore_mem>>) src(%38 : memref<1x128xf32, #tpu.memory_space<any>>) dst(%40 : memref<1x128xf32, #tpu.memory_space<vmem>>)
    %c0_i32_21 = arith.constant 0 : i32
    %c0_i32_22 = arith.constant 0 : i32
    %43 = tpu.memref_slice %arg6[%c0_i32_21, %c0_i32_22] : memref<64x128xf32, #tpu.memory_space<any>> -> memref<1x128xf32, #tpu.memory_space<any>>
    %c1_i32_23 = arith.constant 1 : i32
    %c0_i32_24 = arith.constant 0 : i32
    %44 = tpu.memref_slice %arg8[%11, %c1_i32_23, %c0_i32_24] : memref<2x8x128xf32, #tpu.memory_space<vmem>> -> memref<1x1x128xf32, #tpu.memory_space<vmem>>
    %45 = tpu.memref_squeeze %44 : memref<1x1x128xf32, #tpu.memory_space<vmem>> -> memref<1x128xf32, #tpu.memory_space<vmem>>
    %46 = tpu.memref_slice %arg9[%11] : memref<2x!tpu.dma_semaphore, #tpu.memory_space<semaphore_mem>> -> memref<1x!tpu.dma_semaphore, #tpu.memory_space<semaphore_mem>>
    %47 = tpu.memref_squeeze %46 : memref<1x!tpu.dma_semaphore, #tpu.memory_space<semaphore_mem>> -> memref<!tpu.dma_semaphore, #tpu.memory_space<semaphore_mem>>
    tpu.wait_dma2 semaphore(%47 : memref<!tpu.dma_semaphore, #tpu.memory_space<semaphore_mem>>) src(%43 : memref<1x128xf32, #tpu.memory_space<any>>) dst(%45 : memref<1x128xf32, #tpu.memory_space<vmem>>)
    %c0_i32_25 = arith.constant 0 : i32
    %c0_i32_26 = arith.constant 0 : i32
    %48 = tpu.memref_slice %arg6[%c0_i32_25, %c0_i32_26] : memref<64x128xf32, #tpu.memory_space<any>> -> memref<1x128xf32, #tpu.memory_space<any>>
    %c2_i32_27 = arith.constant 2 : i32
    %c0_i32_28 = arith.constant 0 : i32
    %49 = tpu.memref_slice %arg8[%11, %c2_i32_27, %c0_i32_28] : memref<2x8x128xf32, #tpu.memory_space<vmem>> -> memref<1x1x128xf32, #tpu.memory_space<vmem>>
    %50 = tpu.memref_squeeze %49 : memref<1x1x128xf32, #tpu.memory_space<vmem>> -> memref<1x128xf32, #tpu.memory_space<vmem>>
    %51 = tpu.memref_slice %arg9[%11] : memref<2x!tpu.dma_semaphore, #tpu.memory_space<semaphore_mem>> -> memref<1x!tpu.dma_semaphore, #tpu.memory_space<semaphore_mem>>
    %52 = tpu.memref_squeeze %51 : memref<1x!tpu.dma_semaphore, #tpu.memory_space<semaphore_mem>> -> memref<!tpu.dma_semaphore, #tpu.memory_space<semaphore_mem>>
    tpu.wait_dma2 semaphore(%52 : memref<!tpu.dma_semaphore, #tpu.memory_space<semaphore_mem>>) src(%48 : memref<1x128xf32, #tpu.memory_space<any>>) dst(%50 : memref<1x128xf32, #tpu.memory_space<vmem>>)
    %c0_i32_29 = arith.constant 0 : i32
    %c0_i32_30 = arith.constant 0 : i32
    %53 = tpu.memref_slice %arg6[%c0_i32_29, %c0_i32_30] : memref<64x128xf32, #tpu.memory_space<any>> -> memref<1x128xf32, #tpu.memory_space<any>>
    %c3_i32 = arith.constant 3 : i32
    %c0_i32_31 = arith.constant 0 : i32
    %54 = tpu.memref_slice %arg8[%11, %c3_i32, %c0_i32_31] : memref<2x8x128xf32, #tpu.memory_space<vmem>> -> memref<1x1x128xf32, #tpu.memory_space<vmem>>
    %55 = tpu.memref_squeeze %54 : memref<1x1x128xf32, #tpu.memory_space<vmem>> -> memref<1x128xf32, #tpu.memory_space<vmem>>
    %56 = tpu.memref_slice %arg9[%11] : memref<2x!tpu.dma_semaphore, #tpu.memory_space<semaphore_mem>> -> memref<1x!tpu.dma_semaphore, #tpu.memory_space<semaphore_mem>>
    %57 = tpu.memref_squeeze %56 : memref<1x!tpu.dma_semaphore, #tpu.memory_space<semaphore_mem>> -> memref<!tpu.dma_semaphore, #tpu.memory_space<semaphore_mem>>
    tpu.wait_dma2 semaphore(%57 : memref<!tpu.dma_semaphore, #tpu.memory_space<semaphore_mem>>) src(%53 : memref<1x128xf32, #tpu.memory_space<any>>) dst(%55 : memref<1x128xf32, #tpu.memory_space<vmem>>)
    %c0_i32_32 = arith.constant 0 : i32
    %c0_i32_33 = arith.constant 0 : i32
    %58 = tpu.memref_slice %arg6[%c0_i32_32, %c0_i32_33] : memref<64x128xf32, #tpu.memory_space<any>> -> memref<1x128xf32, #tpu.memory_space<any>>
    %c4_i32 = arith.constant 4 : i32
    %c0_i32_34 = arith.constant 0 : i32
    %59 = tpu.memref_slice %arg8[%11, %c4_i32, %c0_i32_34] : memref<2x8x128xf32, #tpu.memory_space<vmem>> -> memref<1x1x128xf32, #tpu.memory_space<vmem>>
    %60 = tpu.memref_squeeze %59 : memref<1x1x128xf32, #tpu.memory_space<vmem>> -> memref<1x128xf32, #tpu.memory_space<vmem>>
    %61 = tpu.memref_slice %arg9[%11] : memref<2x!tpu.dma_semaphore, #tpu.memory_space<semaphore_mem>> -> memref<1x!tpu.dma_semaphore, #tpu.memory_space<semaphore_mem>>
    %62 = tpu.memref_squeeze %61 : memref<1x!tpu.dma_semaphore, #tpu.memory_space<semaphore_mem>> -> memref<!tpu.dma_semaphore, #tpu.memory_space<semaphore_mem>>
    tpu.wait_dma2 semaphore(%62 : memref<!tpu.dma_semaphore, #tpu.memory_space<semaphore_mem>>) src(%58 : memref<1x128xf32, #tpu.memory_space<any>>) dst(%60 : memref<1x128xf32, #tpu.memory_space<vmem>>)
    %c0_i32_35 = arith.constant 0 : i32
    %c0_i32_36 = arith.constant 0 : i32
    %63 = tpu.memref_slice %arg6[%c0_i32_35, %c0_i32_36] : memref<64x128xf32, #tpu.memory_space<any>> -> memref<1x128xf32, #tpu.memory_space<any>>
    %c5_i32 = arith.constant 5 : i32
    %c0_i32_37 = arith.constant 0 : i32
    %64 = tpu.memref_slice %arg8[%11, %c5_i32, %c0_i32_37] : memref<2x8x128xf32, #tpu.memory_space<vmem>> -> memref<1x1x128xf32, #tpu.memory_space<vmem>>
    %65 = tpu.memref_squeeze %64 : memref<1x1x128xf32, #tpu.memory_space<vmem>> -> memref<1x128xf32, #tpu.memory_space<vmem>>
    %66 = tpu.memref_slice %arg9[%11] : memref<2x!tpu.dma_semaphore, #tpu.memory_space<semaphore_mem>> -> memref<1x!tpu.dma_semaphore, #tpu.memory_space<semaphore_mem>>
    %67 = tpu.memref_squeeze %66 : memref<1x!tpu.dma_semaphore, #tpu.memory_space<semaphore_mem>> -> memref<!tpu.dma_semaphore, #tpu.memory_space<semaphore_mem>>
    tpu.wait_dma2 semaphore(%67 : memref<!tpu.dma_semaphore, #tpu.memory_space<semaphore_mem>>) src(%63 : memref<1x128xf32, #tpu.memory_space<any>>) dst(%65 : memref<1x128xf32, #tpu.memory_space<vmem>>)
    %c0_i32_38 = arith.constant 0 : i32
    %c0_i32_39 = arith.constant 0 : i32
    %68 = tpu.memref_slice %arg6[%c0_i32_38, %c0_i32_39] : memref<64x128xf32, #tpu.memory_space<any>> -> memref<1x128xf32, #tpu.memory_space<any>>
    %c6_i32 = arith.constant 6 : i32
    %c0_i32_40 = arith.constant 0 : i32
    %69 = tpu.memref_slice %arg8[%11, %c6_i32, %c0_i32_40] : memref<2x8x128xf32, #tpu.memory_space<vmem>> -> memref<1x1x128xf32, #tpu.memory_space<vmem>>
    %70 = tpu.memref_squeeze %69 : memref<1x1x128xf32, #tpu.memory_space<vmem>> -> memref<1x128xf32, #tpu.memory_space<vmem>>
    %71 = tpu.memref_slice %arg9[%11] : memref<2x!tpu.dma_semaphore, #tpu.memory_space<semaphore_mem>> -> memref<1x!tpu.dma_semaphore, #tpu.memory_space<semaphore_mem>>
    %72 = tpu.memref_squeeze %71 : memref<1x!tpu.dma_semaphore, #tpu.memory_space<semaphore_mem>> -> memref<!tpu.dma_semaphore, #tpu.memory_space<semaphore_mem>>
    tpu.wait_dma2 semaphore(%72 : memref<!tpu.dma_semaphore, #tpu.memory_space<semaphore_mem>>) src(%68 : memref<1x128xf32, #tpu.memory_space<any>>) dst(%70 : memref<1x128xf32, #tpu.memory_space<vmem>>)
    %c0_i32_41 = arith.constant 0 : i32
    %c0_i32_42 = arith.constant 0 : i32
    %73 = tpu.memref_slice %arg6[%c0_i32_41, %c0_i32_42] : memref<64x128xf32, #tpu.memory_space<any>> -> memref<1x128xf32, #tpu.memory_space<any>>
    %c7_i32 = arith.constant 7 : i32
    %c0_i32_43 = arith.constant 0 : i32
    %74 = tpu.memref_slice %arg8[%11, %c7_i32, %c0_i32_43] : memref<2x8x128xf32, #tpu.memory_space<vmem>> -> memref<1x1x128xf32, #tpu.memory_space<vmem>>
    %75 = tpu.memref_squeeze %74 : memref<1x1x128xf32, #tpu.memory_space<vmem>> -> memref<1x128xf32, #tpu.memory_space<vmem>>
    %76 = tpu.memref_slice %arg9[%11] : memref<2x!tpu.dma_semaphore, #tpu.memory_space<semaphore_mem>> -> memref<1x!tpu.dma_semaphore, #tpu.memory_space<semaphore_mem>>
    %77 = tpu.memref_squeeze %76 : memref<1x!tpu.dma_semaphore, #tpu.memory_space<semaphore_mem>> -> memref<!tpu.dma_semaphore, #tpu.memory_space<semaphore_mem>>
    tpu.wait_dma2 semaphore(%77 : memref<!tpu.dma_semaphore, #tpu.memory_space<semaphore_mem>>) src(%73 : memref<1x128xf32, #tpu.memory_space<any>>) dst(%75 : memref<1x128xf32, #tpu.memory_space<vmem>>)
    %78 = arith.index_cast %11 : i32 to index
    %c0_44 = arith.constant 0 : index
    %c0_45 = arith.constant 0 : index
    %79 = vector.load %arg8[%78, %c0_44, %c0_45] : memref<2x8x128xf32, #tpu.memory_space<vmem>>, vector<1x8x128xf32>
    %80 = vector.shape_cast %79 : vector<1x8x128xf32> to vector<8x128xf32>
    %81 = arith.addf %80, %37 : vector<8x128xf32>
    %c0_46 = arith.constant 0 : index
    %c0_47 = arith.constant 0 : index
    %c0_48 = arith.constant 0 : index
    %82 = vector.load %arg7[%c0_46, %c0_47, %c0_48] : memref<1x8x128xf32, #tpu.memory_space<vmem>>, vector<1x8x128xf32>
    %83 = vector.shape_cast %82 : vector<1x8x128xf32> to vector<8x128xf32>
    %84 = vector.shape_cast %81 : vector<8x128xf32> to vector<1x8x128xf32>
    tpu.vector_store %arg7[%c0_46, %c0_47, %c0_48], %84 {strides = array<i32>} : memref<1x8x128xf32, #tpu.memory_space<vmem>>, vector<1x8x128xf32>,
    return
  }
  func.func @transform_0(%arg0: i32, %arg1: i32, %arg2: memref<16xi32, #tpu.memory_space<smem>>) -> (i32, i32, i32) {
    %c0_i32 = arith.constant 0 : i32
    %c0_i32_0 = arith.constant 0 : i32
    return %arg1, %arg0, %c0_i32 : i32, i32, i32
  }
  func.func @transform_1(%arg0: i32, %arg1: i32, %arg2: memref<16xi32, #tpu.memory_space<smem>>) -> (i32, i32) {
    %c0_i32 = arith.constant 0 : i32
    %c0_i32_0 = arith.constant 0 : i32
    return %arg0, %c0_i32 : i32, i32
  }
  func.func @transform_2(%arg0: i32, %arg1: i32, %arg2: memref<16xi32, #tpu.memory_space<smem>>) -> (i32, i32) {
    %c0_i32 = arith.constant 0 : i32
    %c0_i32_0 = arith.constant 0 : i32
    %c0_i32_1 = arith.constant 0 : i32
    return %c0_i32, %c0_i32_0 : i32, i32
  }
  func.func @transform_4(%arg0: i32, %arg1: i32, %arg2: memref<16xi32, #tpu.memory_space<smem>>) -> (i32, i32, i32) {
    %c0_i32 = arith.constant 0 : i32
    %c0_i32_0 = arith.constant 0 : i32
    return %arg1, %arg0, %c0_i32 : i32, i32, i32
  }
}

</mosaic_0001>

<bundles_post_ra>
// kernel: tpu_custom_call.1
= control target key start
LH: loop header
LB: loop body
LE: loop exit
PB: predicated region body
PF: predicated region fallthrough
CT: control target
= control target key end

     0   :  { %s2176_s0 = inlined_call_operand.vmem [shape: s32[16], index: 0, kind: input, shape index: {}]   ;;  %s2177_s1 = inlined_call_operand.vmem [shape: s32[2,8,1], index: 1, kind: input, shape index: {}]   ;;  %s2178_s2 = inlined_call_operand.vmem [shape: f32[8,128], index: 2, kind: input, shape index: {}]   ;;  %s2179_s3 = inlined_call_operand.vmem [shape: f32[2,128], index: 3, kind: input, shape index: {}]   ;;  %s2180_s4 = inlined_call_operand.hbm [shape: f32[64,128], index: 4, kind: input, shape index: {}]   ;;  %s2181_s5 = inlined_call_operand.hbm [shape: f32[2,8,128], index: 5, kind: output, shape index: {}]  }
   0x1   :  { %2197 = sst [smem:[#allocation70_spill]] %s2177_s1  ;;  %s10_s20 = sshll.u32 %s2176_s0, 4  ;;  %s11_s20 = int_to_ptr.vmem [resolvable:$true] %s10_s20 }
   0x2   :  { %2198 = sst [smem:[#allocation71_spill]] %s2181_s5  ;;  %s930_s21 = scalar_lea.vmem %s11_s20, 16 }
   0x3   :  { %p931_p0 = scmp.ne.s32.totalorder %s11_s20, %s930_s21  ;;  %p935_p1 = scmp.lt.s32.totalorder %s11_s20, %s11_s20 }
   0x4   :  { %p936_p2 = scmp.lt.s32.totalorder %s930_s21, %s930_s21 }
   0x6   :  { %p937_p3 = por %p936_p2, %p935_p1 }
   0x8   :  { %p938_p4 = pnand %p937_p3, %p931_p0 }
   0xa   :  { %941 = shalt.err (!%p938_p4)  }
   0xb   :  { %s1474_s22 = smov [#allocation5]  }
   0xc   :  { %13 = dma.vmem_to_smem %s11_s20, 16, %s1474_s22, [#allocation4] }
   0xd   :  { %1442 = dma.done.wait [#allocation4], 16 }
   0xe   :  { %1443 = vsyncadd [#allocation4], 4294967280 }
   0xf   :  { %15 = sfence }
  0x10   :  { %16 = vsyncpa [#allocation7], 0 }
  0x11   :  { %18 = vsyncpa [#allocation7 + $0x1], 0  ;;  %s1511_s23 = smov 0   ;;  %s1513_s24 = smov 0  }
  0x12   :  { %s1515_s0 = smov 0   ;;  %s1517_s25 = smov 0  }
  0x13   :  { %s1519_s26 = smov 0   ;;  %s1521_s27 = smov 0  }
  0x14 LB: > { %2199 = sst [smem:[#allocation61_spill]] %s1452_s23  ;;  %s763_s28 = sadd.s32 4294967295, %s1472_s27   ;;  %s1472_s27 = sphi %s1521_s27, %s24_s27   ;;  %s1468_s26 = sphi %s1519_s26, %s2266_s26   ;;  %s1464_s25 = sphi %s1517_s25, %s2265_s25   ;;  %s1460_s0 = sphi %s1515_s0, %s2264_s0   ;;  %s1456_s24 = sphi %s1513_s24, %s2263_s24   ;;  %s1452_s23 = sphi %s1511_s23, %s2262_s23  }
  0x15   : > { %2200 = sst [smem:[#allocation62_spill]] %s1456_s24  ;;  %s764_s29 = sadd.s32 4294967294, %s1472_s27  }
  0x16   : > { %2201 = sst [smem:[#allocation63_spill]] %s1460_s0  ;;  %s33_s30 = sadd.s32 1, %s1468_s26 }
  0x17   : > { %2202 = sst [smem:[#allocation64_spill]] %s1468_s26  ;;  %s120_s6 = sadd.s32 1, %s1460_s0 }
  0x18   : > { %2203 = sst [smem:[#allocation65_spill]] %s1472_s27  ;;  %p34_p5 = scmp.ge.s32.totalorder %s33_s30, 2 }
  0x19   : > { %p130_p6 = scmp.ne.s32.totalorder %s1460_s0, %s1456_s24  ;;  %p131_p7 = scmp.eq.s32.totalorder %s763_s28, 1 }
  0x1a   : > { %p136_p8 = scmp.ne.s32.totalorder %s1456_s24, %s1452_s23  ;;  %s2268_s30 = smov (%p34_p5, %s33_s30), 0 }
  0x1b   : > { %2204 = sst [smem:[#allocation66_spill]] %s2268_s30  ;;  %p1551_p9 = por %p131_p7, %p130_p6 }
  0x1c   : > { %p137_p10 = scmp.eq.s32.totalorder %s764_s29, 1  ;;  %s115_s8 = ssub.s32 %s1468_s26, %s2268_s30 }
  0x1d   : > { %s2205_s7 = scalar_select %p1551_p9, 1, 0 }
  0x1e   : > { %p768_p11 = scmp.ge.s32.totalorder %s1472_s27, 1  ;;  %p118_p12 = scmp.eq.s32.totalorder %s115_s8, 0 }
  0x1f   : > { %2206 = sst [smem:[#allocation67_spill]] %s2205_s7  ;;  %p1558_p13 = por %p137_p10, %p136_p8 }
  0x20   : > { %p175_p0 = scmp.lt.s32.totalorder %s1472_s27, 3 }
  0x21   : > { %s2207_s9 = scalar_select %p1558_p13, 1, 0 }
  0x22   : > { %s1564_s10 = scalar_select %p118_p12, %s1460_s0, %s120_s6  }
  0x23   : > { %2208 = sst [smem:[#allocation68_spill]] %s2207_s9  ;;  %p176_p1 = pnand %p768_p11, %p175_p0 }
  0x24   : > { %2209 = sst [smem:[#allocation69_spill]] %s1564_s10  ;;  %p205_p2 = scmp.lt.s32.totalorder (!%p176_p1), %s1464_s25, 1  ;;  %v1475_v0 = vmov (!%p176_p1), 0  }
  0x25   : > { %179 = sbr.rel (%p176_p1) target bundleno = 516 (0x204), region = 32  ;;  %s2182_s11 = sand.u32 (!%p176_p1), 1, %s1456_s24   ;;  %929 = vset.pattern.permute.xlu0 (!%p176_p1), %v1475_v0 }
  0x26   : > { %s1570_s12 = sshll.u32 (!%p176_p1), %s2182_s11, 3  ;;  %p218_p3 = scmp.lt.s32.totalorder (!%p176_p1), %s1464_s25, 0 }
  0x27   : > { %s219_s14 = ssub.s32 (!%p176_p1), 0, %s1464_s25  ;;  %s2210_s1 = sld [smem:[#allocation70_spill]] (!%p176_p1) }
  0x28   : > { %s771_s16 = smin.u32 (!%p176_p1), %s1464_s25, %s219_s14  ;;  %p876_p4 = scmp.eq.s32.totalorder (!%p176_p1), %s1464_s25, 0 }
  0x29   : > { %s221_s20 = sand.u32 (!%p176_p1), 1, %s771_s16   ;;  %s1581_s22 = sshll.u32 (!%p176_p1), %s1464_s25, 3 }
  0x2a   : > { %s222_s21 = ssub.s32 (!%p176_p1), 0, %s221_s20  ;;  %s254_s16 = sadd.s32 (!%p176_p1), 1, %s1581_s22 }
  0x2c   : > { %s206_s13 = scalar_select %p205_p2, %s1464_s25, 1 }
  0x2d   : > { %s2270_s21 = smov (!%p218_p3, %s222_s21), %s221_s20  ;;  %s2274_s16 = smov (!%p876_p4, %s254_s16), 0 }
  0x2e   : > { %s770_s15 = sshll.u32 %s206_s13, 3  ;;  %p773_p5 = scmp.lt.s32.totalorder %s2270_s21, 0 }
  0x2f   : > { %s211_s19 = scalar_lea.vmem %s2210_s1, %s770_s15  ;;  %s228_s28 = sadd.s32 2, %s2270_s21 }
  0x30   : > { %v523_v1 = vld [vmem:[%s211_s19] sm:$0xff]  ;;  %s821_s29 = scalar_select %p876_p4, [#allocation5], [#allocation42] }
  0x31   : > { %vm526_vm0 = vcmp.eq.s32.totalorder %v523_v1, 0  ;;  %s2272_s28 = smov (!%p773_p5, %s228_s28), %s2270_s21  ;;  %s271_s20 = sadd.s32 2, %s1581_s22 }
  0x32   : > { %v527_v2 = vsel %vm526_vm0, 1, %v1475_v0  ;;  %s822_s6 = scalar_select %p876_p4, %s1581_s22, 0 }
  0x33   : > { %529 = vperm.xlu0 %929, %v527_v2   ;;  %s777_s8 = sshll.u32 %s2272_s28, 3  ;;  %s1613_s1 = scalar_lea.sflag [#allocation3], %s2272_s28 }
  0x34   : > { %s237_s13 = sld [smem:[%s821_s29 + %s822_s6]]  ;;  %s1591_s14 = scalar_lea.vmem [#allocation2], %s777_s8 }
  0x35   : > { %s250_s15 = sshll.u32 %s1591_s14, 4  ;;  %s642_s17 = scalar_lea.vmem %s1591_s14, 1 [#allocation2]  ;;  %s1595_s15 = int_to_ptr.vmem [resolvable:$true] %s250_s15 }
  0x36   : > { %s824_s18 = scalar_select %p876_p4, [#allocation5], [#allocation43] }
  0x37   : > { %s267_s19 = sshll.u32 %s642_s17, 4  ;;  %s1622_s17 = scalar_lea.hbm %s2180_s4, 1024  ;;  %s1610_s19 = int_to_ptr.vmem [resolvable:$true] %s267_s19 }
  0x38   : > { %s1603_s11 = sld [smem:[%s824_s18 + %s2274_s16]] }
  0x3a   : > { %s776_s21 = sshll.u32 %s237_s13, 4 }
  0x3b   : > { %s1608_s8 = scalar_lea.hbm %s2180_s4, %s776_s21 }
  0x3c   : > { %s942_s30 = scalar_lea.hbm %s1608_s8, 16  ;;  %p947_p10 = scmp.lt.u32.totalorder %s1608_s8, %s2180_s4 }
  0x3d   : > { %p943_p6 = scmp.ne.s32.totalorder %s1608_s8, %s942_s30  ;;  %p948_p11 = scmp.lt.u32.totalorder %s1622_s17, %s942_s30 }
  0x3e   : > { %p950_p0 = scmp.lt.u32.totalorder %s942_s30, %s1608_s8 }
  0x3f   : > { %p944_p7 = pnand %p943_p6, %p876_p4  ;;  %p949_p12 = por %p948_p11, %p947_p10 }
  0x41   : > { %p945_p8 = pneg %p944_p7  ;;  %p951_p1 = por %p950_p0, %p949_p12 }
  0x43   : > { %p952_p2 = pnand %p951_p1, %p945_p8 }
  0x45   : > { %955 = shalt.err (!%p952_p2)  }
  0x46   : > { %s956_s29 = scalar_lea.vmem %s1595_s15, 16  ;;  %s1476_s6 = smov [#allocation2]  }
  0x47   : > { %p957_p3 = scmp.ne.s32.totalorder %s1595_s15, %s956_s29  ;;  %s960_s13 = sshll.u32 %s1476_s6, 4  ;;  %s1634_s13 = int_to_ptr.vmem [resolvable:$false] %s960_s13 }
  0x48   : > { %s1637_s16 = scalar_lea.vmem %s1634_s13, 256  ;;  %p963_p7 = scmp.lt.s32.totalorder %s1595_s15, %s1634_s13 }
  0x49   : > { %p958_p5 = pnand %p957_p3, %p876_p4  ;;  %p964_p8 = scmp.lt.s32.totalorder %s1637_s16, %s956_s29 }
  0x4b   : > { %p959_p6 = pneg %p958_p5  ;;  %p965_p10 = por %p964_p8, %p963_p7 }
  0x4d   : > { %p966_p11 = pnand %p965_p10, %p959_p6 }
  0x4f   : > { %969 = shalt.err (!%p966_p11)  }
  0x50   : > { %823 = dma.hbm_to_vmem [thread:$0]  (%p876_p4), %s1608_s8, 16, %s1595_s15, %s1613_s1 }
  0x51   : > { %s827_s30 = scalar_select %p876_p4, [#allocation5], [#allocation44] }
  0x52   : > { %s2276_s20 = smov (!%p876_p4, %s271_s20), 0  ;;  %s647_s18 = scalar_lea.vmem %s1591_s14, 2 [#allocation2] }
  0x53   : > { %s288_s21 = sadd.s32 3, %s1581_s22  ;;  %s778_s29 = sshll.u32 %s1603_s11, 4 }
  0x54   : > { %s1656_s6 = sld [smem:[%s827_s30 + %s2276_s20]]  ;;  %s257_s0 = scalar_lea.hbm %s2180_s4, %s778_s29 }
  0x55   : > { %s284_s9 = sshll.u32 %s647_s18, 4  ;;  %s970_s23 = scalar_lea.hbm %s257_s0, 16  ;;  %s1678_s9 = int_to_ptr.vmem [resolvable:$true] %s284_s9 }
  0x56   : > { %p971_p12 = scmp.ne.s32.totalorder %s257_s0, %s970_s23  ;;  %p975_p2 = scmp.lt.u32.totalorder %s257_s0, %s2180_s4 }
  0x57   : > { %p976_p3 = scmp.lt.u32.totalorder %s1622_s17, %s970_s23  ;;  %p978_p6 = scmp.lt.u32.totalorder %s970_s23, %s257_s0 }
  0x58   : > { %p972_p0 = pnand %p971_p12, %p876_p4 }
  0x59   : > { %p977_p5 = por %p976_p3, %p975_p2 }
  0x5a   : > { %p973_p1 = pneg %p972_p0 }
  0x5b   : > { %p979_p7 = por %p978_p6, %p977_p5 }
  0x5d   : > { %p980_p8 = pnand %p979_p7, %p973_p1 }
  0x5f   : > { %983 = shalt.err (!%p980_p8)  }
  0x60   : > { %s984_s26 = scalar_lea.vmem %s1610_s19, 16  ;;  %p991_p0 = scmp.lt.s32.totalorder %s1610_s19, %s1634_s13 }
  0x61   : > { %p985_p10 = scmp.ne.s32.totalorder %s1610_s19, %s984_s26  ;;  %p992_p13 = scmp.lt.s32.totalorder %s1637_s16, %s984_s26 }
  0x63   : > { %p986_p11 = pnand %p985_p10, %p876_p4  ;;  %p993_p9 = por %p992_p13, %p991_p0 }
  0x65   : > { %p987_p12 = pneg %p986_p11 }
  0x67   : > { %p994_p2 = pnand %p993_p9, %p987_p12 }
  0x69   : > { %997 = shalt.err (!%p994_p2)  }
  0x6a   : > { %826 = dma.hbm_to_vmem [thread:$0]  (%p876_p4), %s257_s0, 16, %s1610_s19, %s1613_s1 }
  0x6b   : > { %s652_s23 = scalar_lea.vmem %s1591_s14, 3 [#allocation2]  ;;  %s2278_s21 = smov (!%p876_p4, %s288_s21), 0 }
  0x6c   : > { %s830_s10 = scalar_select %p876_p4, [#allocation5], [#allocation45] }
  0x6d   : > { %s780_s11 = sshll.u32 %s1656_s6, 4  ;;  %s301_s20 = sshll.u32 %s652_s23, 4  ;;  %s1708_s20 = int_to_ptr.vmem [resolvable:$true] %s301_s20 }
  0x6e   : > { %s274_s29 = scalar_lea.hbm %s2180_s4, %s780_s11  ;;  %s1689_s15 = sld [smem:[%s830_s10 + %s2278_s21]] }
  0x6f   : > { %s998_s8 = scalar_lea.hbm %s274_s29, 16  ;;  %p1003_p3 = scmp.lt.u32.totalorder %s274_s29, %s2180_s4 }
  0x70   : > { %p999_p9 = scmp.ne.s32.totalorder %s274_s29, %s998_s8  ;;  %p1004_p5 = scmp.lt.u32.totalorder %s1622_s17, %s998_s8 }
  0x71   : > { %p1006_p7 = scmp.lt.u32.totalorder %s998_s8, %s274_s29 }
  0x72   : > { %p1000_p13 = pnand %p999_p9, %p876_p4  ;;  %p1005_p6 = por %p1004_p5, %p1003_p3 }
  0x74   : > { %p1001_p1 = pneg %p1000_p13  ;;  %p1007_p8 = por %p1006_p7, %p1005_p6 }
  0x76   : > { %p1008_p10 = pnand %p1007_p8, %p1001_p1 }
  0x78   : > { %1011 = shalt.err (!%p1008_p10)  }
  0x79   : > { %s1012_s21 = scalar_lea.vmem %s1678_s9, 16  ;;  %p1019_p2 = scmp.lt.s32.totalorder %s1678_s9, %s1634_s13 }
  0x7a   : > { %p1013_p11 = scmp.ne.s32.totalorder %s1678_s9, %s1012_s21  ;;  %p1020_p9 = scmp.lt.s32.totalorder %s1637_s16, %s1012_s21 }
  0x7c   : > { %p1014_p12 = pnand %p1013_p11, %p876_p4  ;;  %p1021_p13 = por %p1020_p9, %p1019_p2 }
  0x7e   : > { %p1015_p0 = pneg %p1014_p12 }
  0x80   : > { %p1022_p3 = pnand %p1021_p13, %p1015_p0 }
  0x82   : > { %1025 = shalt.err (!%p1022_p3)  }
  0x83   : > { %829 = dma.hbm_to_vmem [thread:$0]  (%p876_p4), %s274_s29, 16, %s1678_s9, %s1613_s1 }
  0x84   : > { %s305_s6 = sadd.s32 4, %s1581_s22  ;;  %s657_s23 = scalar_lea.vmem %s1591_s14, 4 [#allocation2] }
  0x85   : > { %s833_s26 = scalar_select %p876_p4, [#allocation5], [#allocation46] }
  0x86   : > { %s2280_s6 = smov (!%p876_p4, %s305_s6), 0  ;;  %s322_s10 = sadd.s32 5, %s1581_s22 }
  0x87   : > { %s782_s11 = sshll.u32 %s1689_s15, 4  ;;  %s1718_s30 = sld [smem:[%s833_s26 + %s2280_s6]] }
  0x88   : > { %s291_s0 = scalar_lea.hbm %s2180_s4, %s782_s11  ;;  %s318_s19 = sshll.u32 %s657_s23, 4  ;;  %s1740_s19 = int_to_ptr.vmem [resolvable:$true] %s318_s19 }
  0x89   : > { %s1026_s21 = scalar_lea.hbm %s291_s0, 16  ;;  %p1031_p7 = scmp.lt.u32.totalorder %s291_s0, %s2180_s4 }
  0x8a   : > { %p1027_p1 = scmp.ne.s32.totalorder %s291_s0, %s1026_s21  ;;  %p1032_p8 = scmp.lt.u32.totalorder %s1622_s17, %s1026_s21 }
  0x8b   : > { %p1034_p11 = scmp.lt.u32.totalorder %s1026_s21, %s291_s0 }
  0x8c   : > { %p1028_p5 = pnand %p1027_p1, %p876_p4  ;;  %p1033_p10 = por %p1032_p8, %p1031_p7 }
  0x8e   : > { %p1029_p6 = pneg %p1028_p5  ;;  %p1035_p12 = por %p1034_p11, %p1033_p10 }
  0x90   : > { %p1036_p0 = pnand %p1035_p12, %p1029_p6 }
  0x92   : > { %1039 = shalt.err (!%p1036_p0)  }
  0x93   : > { %s1040_s15 = scalar_lea.vmem %s1708_s20, 16  ;;  %p1047_p3 = scmp.lt.s32.totalorder %s1708_s20, %s1634_s13 }
  0x94   : > { %p1041_p2 = scmp.ne.s32.totalorder %s1708_s20, %s1040_s15  ;;  %p1048_p1 = scmp.lt.s32.totalorder %s1637_s16, %s1040_s15 }
  0x96   : > { %p1042_p9 = pnand %p1041_p2, %p876_p4  ;;  %p1049_p5 = por %p1048_p1, %p1047_p3 }
  0x98   : > { %p1043_p13 = pneg %p1042_p9 }
  0x9a   : > { %p1050_p7 = pnand %p1049_p5, %p1043_p13 }
  0x9c   : > { %1053 = shalt.err (!%p1050_p7)  }
  0x9d   : > { %832 = dma.hbm_to_vmem [thread:$0]  (%p876_p4), %s291_s0, 16, %s1708_s20, %s1613_s1 }
  0x9e   : > { %s662_s6 = scalar_lea.vmem %s1591_s14, 5 [#allocation2]  ;;  %s2282_s10 = smov (!%p876_p4, %s322_s10), 0 }
  0x9f   : > { %s836_s26 = scalar_select %p876_p4, [#allocation5], [#allocation47] }
  0xa0   : > { %s784_s23 = sshll.u32 %s1718_s30, 4  ;;  %s335_s11 = sshll.u32 %s662_s6, 4  ;;  %s1770_s11 = int_to_ptr.vmem [resolvable:$true] %s335_s11 }
  0xa1   : > { %s308_s21 = scalar_lea.hbm %s2180_s4, %s784_s23  ;;  %s1751_s9 = sld [smem:[%s836_s26 + %s2282_s10]] }
  0xa2   : > { %s1054_s29 = scalar_lea.hbm %s308_s21, 16  ;;  %p1059_p11 = scmp.lt.u32.totalorder %s308_s21, %s2180_s4 }
  0xa3   : > { %p1055_p6 = scmp.ne.s32.totalorder %s308_s21, %s1054_s29  ;;  %p1060_p12 = scmp.lt.u32.totalorder %s1622_s17, %s1054_s29 }
  0xa4   : > { %p1062_p2 = scmp.lt.u32.totalorder %s1054_s29, %s308_s21 }
  0xa5   : > { %p1056_p8 = pnand %p1055_p6, %p876_p4  ;;  %p1061_p0 = por %p1060_p12, %p1059_p11 }
  0xa7   : > { %p1057_p10 = pneg %p1056_p8  ;;  %p1063_p9 = por %p1062_p2, %p1061_p0 }
  0xa9   : > { %p1064_p13 = pnand %p1063_p9, %p1057_p10 }
  0xab   : > { %1067 = shalt.err (!%p1064_p13)  }
  0xac   : > { %s1068_s10 = scalar_lea.vmem %s1740_s19, 16  ;;  %p1075_p7 = scmp.lt.s32.totalorder %s1740_s19, %s1634_s13 }
  0xad   : > { %p1069_p3 = scmp.ne.s32.totalorder %s1740_s19, %s1068_s10  ;;  %p1076_p6 = scmp.lt.s32.totalorder %s1637_s16, %s1068_s10 }
  0xaf   : > { %p1070_p1 = pnand %p1069_p3, %p876_p4  ;;  %p1077_p8 = por %p1076_p6, %p1075_p7 }
  0xb1   : > { %p1071_p5 = pneg %p1070_p1 }
  0xb3   : > { %p1078_p11 = pnand %p1077_p8, %p1071_p5 }
  0xb5   : > { %1081 = shalt.err (!%p1078_p11)  }
  0xb6   : > { %835 = dma.hbm_to_vmem [thread:$0]  (%p876_p4), %s308_s21, 16, %s1740_s19, %s1613_s1 }
  0xb7   : > { %s339_s30 = sadd.s32 6, %s1581_s22  ;;  %s667_s6 = scalar_lea.vmem %s1591_s14, 6 [#allocation2] }
  0xb8   : > { %s839_s15 = scalar_select %p876_p4, [#allocation5], [#allocation48] }
  0xb9   : > { %s2284_s30 = smov (!%p876_p4, %s339_s30), 0  ;;  %s356_s26 = sadd.s32 7, %s1581_s22 }
  0xba   : > { %s786_s23 = sshll.u32 %s1751_s9, 4  ;;  %s1780_s18 = sld [smem:[%s839_s15 + %s2284_s30]] }
  0xbb   : > { %s325_s20 = scalar_lea.hbm %s2180_s4, %s786_s23  ;;  %s352_s0 = sshll.u32 %s667_s6, 4  ;;  %s1802_s0 = int_to_ptr.vmem [resolvable:$true] %s352_s0 }
  0xbc   : > { %s1082_s10 = scalar_lea.hbm %s325_s20, 16  ;;  %p1087_p2 = scmp.lt.u32.totalorder %s325_s20, %s2180_s4 }
  0xbd   : > { %p1083_p10 = scmp.ne.s32.totalorder %s325_s20, %s1082_s10  ;;  %p1088_p9 = scmp.lt.u32.totalorder %s1622_s17, %s1082_s10 }
  0xbe   : > { %p1090_p3 = scmp.lt.u32.totalorder %s1082_s10, %s325_s20 }
  0xbf   : > { %p1084_p12 = pnand %p1083_p10, %p876_p4  ;;  %p1089_p13 = por %p1088_p9, %p1087_p2 }
  0xc1   : > { %p1085_p0 = pneg %p1084_p12  ;;  %p1091_p1 = por %p1090_p3, %p1089_p13 }
  0xc3   : > { %p1092_p5 = pnand %p1091_p1, %p1085_p0 }
  0xc5   : > { %1095 = shalt.err (!%p1092_p5)  }
  0xc6   : > { %s1096_s22 = scalar_lea.vmem %s1770_s11, 16  ;;  %p1103_p11 = scmp.lt.s32.totalorder %s1770_s11, %s1634_s13 }
  0xc7   : > { %p1097_p7 = scmp.ne.s32.totalorder %s1770_s11, %s1096_s22  ;;  %p1104_p10 = scmp.lt.s32.totalorder %s1637_s16, %s1096_s22 }
  0xc9   : > { %p1098_p6 = pnand %p1097_p7, %p876_p4  ;;  %p1105_p12 = por %p1104_p10, %p1103_p11 }
  0xcb   : > { %p1099_p8 = pneg %p1098_p6 }
  0xcd   : > { %p1106_p2 = pnand %p1105_p12, %p1099_p8 }
  0xcf   : > { %1109 = shalt.err (!%p1106_p2)  }
  0xd0   : > { %838 = dma.hbm_to_vmem [thread:$0]  (%p876_p4), %s325_s20, 16, %s1770_s11, %s1613_s1 }
  0xd1   : > { %s672_s9 = scalar_lea.vmem %s1591_s14, 7 [#allocation2]  ;;  %s2286_s26 = smov (!%p876_p4, %s356_s26), 0 }
  0xd2   : > { %s842_s30 = scalar_select %p876_p4, [#allocation5], [#allocation49] }
  0xd3   : > { %s788_s15 = sshll.u32 %s1780_s18, 4  ;;  %s369_s6 = sshll.u32 %s672_s9, 4  ;;  %s1832_s6 = int_to_ptr.vmem [resolvable:$true] %s369_s6 }
  0xd4   : > { %s342_s29 = scalar_lea.hbm %s2180_s4, %s788_s15  ;;  %s1813_s10 = sld [smem:[%s842_s30 + %s2286_s26]] }
  0xd5   : > { %s1110_s19 = scalar_lea.hbm %s342_s29, 16  ;;  %p1115_p3 = scmp.lt.u32.totalorder %s342_s29, %s2180_s4 }
  0xd6   : > { %p1111_p0 = scmp.ne.s32.totalorder %s342_s29, %s1110_s19  ;;  %p1116_p1 = scmp.lt.u32.totalorder %s1622_s17, %s1110_s19 }
  0xd7   : > { %p1118_p7 = scmp.lt.u32.totalorder %s1110_s19, %s342_s29 }
  0xd8   : > { %p1112_p9 = pnand %p1111_p0, %p876_p4  ;;  %p1117_p5 = por %p1116_p1, %p1115_p3 }
  0xda   : > { %p1113_p13 = pneg %p1112_p9  ;;  %p1119_p6 = por %p1118_p7, %p1117_p5 }
  0xdc   : > { %p1120_p8 = pnand %p1119_p6, %p1113_p13 }
  0xde   : > { %1123 = shalt.err (!%p1120_p8)  }
  0xdf   : > { %s1124_s26 = scalar_lea.vmem %s1802_s0, 16  ;;  %p1131_p2 = scmp.lt.s32.totalorder %s1802_s0, %s1634_s13 }
  0xe0   : > { %p1125_p11 = scmp.ne.s32.totalorder %s1802_s0, %s1124_s26  ;;  %p1132_p0 = scmp.lt.s32.totalorder %s1637_s16, %s1124_s26 }
  0xe2   : > { %p1126_p10 = pnand %p1125_p11, %p876_p4  ;;  %p1133_p9 = por %p1132_p0, %p1131_p2 }
  0xe4   : > { %p1127_p12 = pneg %p1126_p10 }
  0xe6   : > { %p1134_p1 = pnand %p1133_p9, %p1127_p12 }
  0xe8   : > { %1137 = shalt.err (!%p1134_p1)  }
  0xe9   : > { %841 = dma.hbm_to_vmem [thread:$0]  (%p876_p4), %s342_s29, 16, %s1802_s0, %s1613_s1 }
  0xea   : > { %s1835_s18 = sadd.s32 1, %s1464_s25  ;;  %s2190_s21 = ssub.s32 1, %s2272_s28 }
  0xeb   : > { %p2189_p13 = scmp.lt.s32.totalorder %s1835_s18, 2  ;;  %s790_s9 = sshll.u32 %s1813_s10, 4 }
  0xec   : > { %s796_s30 = sshll.u32 %s2190_s21, 3  ;;  %s359_s0 = scalar_lea.hbm %s2180_s4, %s790_s9 }
  0xed   : > { %s1842_s22 = scalar_select %p2189_p13, [#allocation5], [#allocation50] }
  0xee   : > { %s1138_s8 = scalar_lea.hbm %s359_s0, 16  ;;  %p1143_p8 = scmp.lt.u32.totalorder %s359_s0, %s2180_s4 }
  0xef   : > { %p1139_p5 = scmp.ne.s32.totalorder %s359_s0, %s1138_s8  ;;  %p1144_p11 = scmp.lt.u32.totalorder %s1622_s17, %s1138_s8 }
  0xf0   : > { %p1146_p12 = scmp.lt.u32.totalorder %s1138_s8, %s359_s0 }
  0xf1   : > { %p1140_p7 = pnand %p1139_p5, %p876_p4  ;;  %p1145_p10 = por %p1144_p11, %p1143_p8 }
  0xf3   : > { %p1141_p6 = pneg %p1140_p7  ;;  %p1147_p2 = por %p1146_p12, %p1145_p10 }
  0xf5   : > { %p1148_p0 = pnand %p1147_p2, %p1141_p6 }
  0xf7   : > { %1151 = shalt.err (!%p1148_p0)  }
  0xf8   : > { %s1152_s10 = scalar_lea.vmem %s1832_s6, 16  ;;  %p1159_p7 = scmp.lt.s32.totalorder %s1832_s6, %s1634_s13 }
  0xf9   : > { %p1153_p9 = scmp.ne.s32.totalorder %s1832_s6, %s1152_s10  ;;  %p1160_p13 = scmp.lt.s32.totalorder %s1637_s16, %s1152_s10 }
  0xfb   : > { %p1154_p1 = pnand %p1153_p9, %p876_p4  ;;  %p1161_p3 = por %p1160_p13, %p1159_p7 }
  0xfd   : > { %p1155_p5 = pneg %p1154_p1 }
  0xff   : > { %p1162_p8 = pnand %p1161_p3, %p1155_p5 }
 0x101   : > { %1165 = shalt.err (!%p1162_p8)  }
 0x102   : > { %844 = dma.hbm_to_vmem [thread:$0]  (%p876_p4), %s359_s0, 16, %s1832_s6, %s1613_s1 }
 0x103   : > { %p2211_p6 = scmp.eq.s32.totalorder %s1835_s18, 2  ;;  %s1872_s15 = scalar_lea.vmem [#allocation2], %s796_s30 }
 0x104   : > { %s400_s23 = sshll.u32 %s1872_s15, 4  ;;  %p2213_p4 = scmp.lt.s32.totalorder %s1835_s18, 2  ;;  %s1877_s23 = int_to_ptr.vmem [resolvable:$true] %s400_s23 }
 0x105   : > { %s380_s11 = scalar_select %p2211_p6, 0, %s1835_s18 }
 0x106   : > { %p2212_p11 = pmov %p2211_p6  ;;  %s682_s29 = scalar_lea.vmem %s1872_s15, 1 [#allocation2] }
 0x107   : > { %s793_s26 = sshll.u32 %s380_s11, 3  ;;  %s417_s30 = sshll.u32 %s682_s29, 4  ;;  %s1889_s30 = int_to_ptr.vmem [resolvable:$true] %s417_s30 }
 0x108   : > { %s382_s20 = scalar_select %p2212_p11, 1, 0 }
 0x109   : > { %p2214_p13 = pmov %p2213_p4  ;;  %p2215_p3 = pmov %p2213_p4 }
 0x10a   : > { %s794_s9 = sshll.u32 %s382_s20, 3  ;;  %s2217_s29 = ssub.s32 1, %s2272_s28 }
 0x10b   : > { %s1875_s8 = sadd.s32 %s794_s9, %s793_s26  ;;  %s687_s26 = scalar_lea.vmem %s1872_s15, 2 [#allocation2] }
 0x10c   : > { %s847_s6 = scalar_select %p2213_p4, %s1875_s8, 0 }
 0x10d   : > { %s404_s0 = sadd.s32 1, %s1875_s8  ;;  %s421_s11 = sadd.s32 2, %s1875_s8 }
 0x10e   : > { %s387_s19 = sld [smem:[%s1842_s22 + %s847_s6]]  ;;  %s2288_s0 = smov (!%p2215_p3, %s404_s0), 0 }
 0x10f   : > { %s849_s10 = scalar_select %p2214_p13, [#allocation5], [#allocation51] }
 0x110   : > { %p2216_p10 = pmov %p2215_p3  ;;  %s434_s27 = sshll.u32 %s687_s26, 4  ;;  %s1902_s27 = int_to_ptr.vmem [resolvable:$true] %s434_s27 }
 0x111   : > { %s1892_s20 = sld [smem:[%s849_s10 + %s2288_s0]]  ;;  %s1906_s7 = scalar_lea.sflag [#allocation3], %s2217_s29 }
 0x112   : > { %s1897_s9 = scalar_select %p2216_p10, [#allocation5], [#allocation52] }
 0x113   : > { %p2218_p2 = pmov %p2215_p3 }
 0x114   : > { %s795_s21 = sshll.u32 %s387_s19, 4 }
 0x115   : > { %s389_s6 = scalar_lea.hbm %s2180_s4, %s795_s21 }
 0x116   : > { %s1166_s24 = scalar_lea.hbm %s389_s6, 16  ;;  %p1171_p1 = scmp.lt.u32.totalorder %s389_s6, %s2180_s4 }
 0x117   : > { %p1167_p12 = scmp.ne.s32.totalorder %s389_s6, %s1166_s24  ;;  %p1172_p5 = scmp.lt.u32.totalorder %s1622_s17, %s1166_s24 }
 0x118   : > { %p1174_p8 = scmp.lt.u32.totalorder %s1166_s24, %s389_s6 }
 0x119   : > { %p1168_p0 = pnand %p1167_p12, %p2218_p2  ;;  %p1173_p7 = por %p1172_p5, %p1171_p1 }
 0x11b   : > { %p1169_p9 = pneg %p1168_p0  ;;  %p1175_p6 = por %p1174_p8, %p1173_p7 }
 0x11d   : > { %p1176_p11 = pnand %p1175_p6, %p1169_p9 }
 0x11f   : > { %1179 = shalt.err (!%p1176_p11)  }
 0x120   : > { %s1180_s5 = scalar_lea.vmem %s1877_s23, 16  ;;  %p2219_p13 = pmov %p2218_p2 }
 0x121   : > { %p1181_p4 = scmp.ne.s32.totalorder %s1877_s23, %s1180_s5  ;;  %p1187_p12 = scmp.lt.s32.totalorder %s1877_s23, %s1634_s13 }
 0x122   : > { %p1188_p2 = scmp.lt.s32.totalorder %s1637_s16, %s1180_s5 }
 0x123   : > { %p1182_p3 = pnand %p1181_p4, %p2219_p13 }
 0x124   : > { %p1189_p0 = por %p1188_p2, %p1187_p12 }
 0x125   : > { %p1183_p10 = pneg %p1182_p3 }
 0x127   : > { %p1190_p1 = pnand %p1189_p0, %p1183_p10 }
 0x129   : > { %1193 = shalt.err (!%p1190_p1)  }
 0x12a   : > { %p2220_p5 = pmov %p2219_p13  ;;  %s797_s24 = sshll.u32 %s1892_s20, 4 }
 0x12b   : > { %s438_s28 = sadd.s32 3, %s1875_s8  ;;  %s407_s26 = scalar_lea.hbm %s2180_s4, %s797_s24 }
 0x12c   : > { %848 = dma.hbm_to_vmem [thread:$0]  (%p2220_p5), %s389_s6, 16, %s1877_s23, %s1906_s7 }
 0x12d   : > { %p2221_p9 = pmov %p2220_p5  ;;  %s1194_s29 = scalar_lea.hbm %s407_s26, 16 }
 0x12e   : > { %p1195_p7 = scmp.ne.s32.totalorder %s407_s26, %s1194_s29  ;;  %p2222_p8 = pmov %p2220_p5 }
 0x12f   : > { %s2290_s11 = smov (!%p2221_p9, %s421_s11), 0  ;;  %p1199_p4 = scmp.lt.u32.totalorder %s407_s26, %s2180_s4 }
 0x130   : > { %s1935_s22 = sld [smem:[%s1897_s9 + %s2290_s11]]  ;;  %p1196_p6 = pnand %p1195_p7, %p2222_p8 }
 0x131   : > { %p1200_p13 = scmp.lt.u32.totalorder %s1622_s17, %s1194_s29  ;;  %p1202_p10 = scmp.lt.u32.totalorder %s1194_s29, %s407_s26 }
 0x132   : > { %p1197_p11 = pneg %p1196_p6 }
 0x133   : > { %p1201_p3 = por %p1200_p13, %p1199_p4 }
 0x135   : > { %p1203_p12 = por %p1202_p10, %p1201_p3 }
 0x137   : > { %p1204_p2 = pnand %p1203_p12, %p1197_p11 }
 0x139   : > { %1207 = shalt.err (!%p1204_p2)  }
 0x13a   : > { %s1208_s23 = scalar_lea.vmem %s1889_s30, 16  ;;  %p2223_p1 = pmov %p2220_p5 }
 0x13b   : > { %p1209_p0 = scmp.ne.s32.totalorder %s1889_s30, %s1208_s23  ;;  %p1215_p7 = scmp.lt.s32.totalorder %s1889_s30, %s1634_s13 }
 0x13c   : > { %p1216_p8 = scmp.lt.s32.totalorder %s1637_s16, %s1208_s23 }
 0x13d   : > { %p1210_p5 = pnand %p1209_p0, %p2223_p1 }
 0x13e   : > { %p1217_p6 = por %p1216_p8, %p1215_p7 }
 0x13f   : > { %p1211_p9 = pneg %p1210_p5 }
 0x141   : > { %p1218_p4 = pnand %p1217_p6, %p1211_p9 }
 0x143   : > { %1221 = shalt.err (!%p1218_p4)  }
 0x144   : > { %p2224_p13 = pmov %p2223_p1  ;;  %p2225_p11 = pmov %p2223_p1 }
 0x145   : > { %p2226_p3 = pmov %p2223_p1  ;;  %s692_s20 = scalar_lea.vmem %s1872_s15, 3 [#allocation2] }
 0x146   : > { %851 = dma.hbm_to_vmem [thread:$0]  (%p2224_p13), %s407_s26, 16, %s1889_s30, %s1906_s7 }
 0x147   : > { %s855_s11 = scalar_select %p2225_p11, [#allocation5], [#allocation53] }
 0x148   : > { %s2292_s28 = smov (!%p2226_p3, %s438_s28), 0  ;;  %s455_s9 = sadd.s32 4, %s1875_s8 }
 0x149   : > { %s1960_s6 = sld [smem:[%s855_s11 + %s2292_s28]]  ;;  %s451_s5 = sshll.u32 %s692_s20, 4  ;;  %s1963_s5 = int_to_ptr.vmem [resolvable:$true] %s451_s5 }
 0x14a   : > { %s799_s24 = sshll.u32 %s1935_s22, 4  ;;  %s697_s0 = scalar_lea.vmem %s1872_s15, 4 [#allocation2] }
 0x14b   : > { %s424_s29 = scalar_lea.hbm %s2180_s4, %s799_s24  ;;  %p2227_p12 = pmov %p2223_p1 }
 0x14c   : > { %s1222_s10 = scalar_lea.hbm %s424_s29, 16  ;;  %p1227_p1 = scmp.lt.u32.totalorder %s424_s29, %s2180_s4 }
 0x14d   : > { %p1223_p10 = scmp.ne.s32.totalorder %s424_s29, %s1222_s10  ;;  %p1228_p5 = scmp.lt.u32.totalorder %s1622_s17, %s1222_s10 }
 0x14e   : > { %p1230_p7 = scmp.lt.u32.totalorder %s1222_s10, %s424_s29 }
 0x14f   : > { %p1224_p2 = pnand %p1223_p10, %p2227_p12  ;;  %p1229_p9 = por %p1228_p5, %p1227_p1 }
 0x151   : > { %p1225_p0 = pneg %p1224_p2  ;;  %p1231_p8 = por %p1230_p7, %p1229_p9 }
 0x153   : > { %p1232_p6 = pnand %p1231_p8, %p1225_p0 }
 0x155   : > { %1235 = shalt.err (!%p1232_p6)  }
 0x156   : > { %s1236_s28 = scalar_lea.vmem %s1902_s27, 16  ;;  %p2228_p13 = pmov %p2226_p3 }
 0x157   : > { %p1237_p4 = scmp.ne.s32.totalorder %s1902_s27, %s1236_s28  ;;  %p1243_p10 = scmp.lt.s32.totalorder %s1902_s27, %s1634_s13 }
 0x158   : > { %p1244_p12 = scmp.lt.s32.totalorder %s1637_s16, %s1236_s28 }
 0x159   : > { %p1238_p11 = pnand %p1237_p4, %p2228_p13 }
 0x15a   : > { %p1245_p2 = por %p1244_p12, %p1243_p10 }
 0x15b   : > { %p1239_p3 = pneg %p1238_p11 }
 0x15d   : > { %p1246_p1 = pnand %p1245_p2, %p1239_p3 }
 0x15f   : > { %1249 = shalt.err (!%p1246_p1)  }
 0x160   : > { %p2229_p5 = pmov %p2228_p13  ;;  %s801_s23 = sshll.u32 %s1960_s6, 4 }
 0x161   : > { %s468_s11 = sshll.u32 %s697_s0, 4  ;;  %s441_s21 = scalar_lea.hbm %s2180_s4, %s801_s23  ;;  %s2015_s11 = int_to_ptr.vmem [resolvable:$true] %s468_s11 }
 0x162   : > { %854 = dma.hbm_to_vmem [thread:$0]  (%p2229_p5), %s424_s29, 16, %s1902_s27, %s1906_s7 }
 0x163   : > { %p2230_p0 = pmov %p2229_p5  ;;  %s1250_s10 = scalar_lea.hbm %s441_s21, 16 }
 0x164   : > { %p1251_p7 = scmp.ne.s32.totalorder %s441_s21, %s1250_s10  ;;  %p1255_p13 = scmp.lt.u32.totalorder %s441_s21, %s2180_s4 }
 0x165   : > { %s858_s22 = scalar_select %p2230_p0, [#allocation5], [#allocation54] }
 0x166   : > { %p2231_p9 = pmov %p2230_p0  ;;  %p2232_p8 = pmov %p2230_p0 }
 0x167   : > { %p1256_p11 = scmp.lt.u32.totalorder %s1622_s17, %s1250_s10  ;;  %p1258_p10 = scmp.lt.u32.totalorder %s1250_s10, %s441_s21 }
 0x168   : > { %s2294_s9 = smov (!%p2231_p9, %s455_s9), 0  ;;  %p1252_p6 = pnand %p1251_p7, %p2232_p8 }
 0x169   : > { %s1996_s19 = sld [smem:[%s858_s22 + %s2294_s9]]  ;;  %p1257_p3 = por %p1256_p11, %p1255_p13 }
 0x16a   : > { %p1253_p4 = pneg %p1252_p6 }
 0x16b   : > { %p1259_p12 = por %p1258_p10, %p1257_p3 }
 0x16d   : > { %p1260_p2 = pnand %p1259_p12, %p1253_p4 }
 0x16f   : > { %1263 = shalt.err (!%p1260_p2)  }
 0x170   : > { %s1264_s9 = scalar_lea.vmem %s1963_s5, 16  ;;  %p2233_p5 = pmov %p2230_p0 }
 0x171   : > { %p1265_p1 = scmp.ne.s32.totalorder %s1963_s5, %s1264_s9  ;;  %p1271_p7 = scmp.lt.s32.totalorder %s1963_s5, %s1634_s13 }
 0x172   : > { %p1272_p8 = scmp.lt.s32.totalorder %s1637_s16, %s1264_s9 }
 0x173   : > { %p1266_p0 = pnand %p1265_p1, %p2233_p5 }
 0x174   : > { %p1273_p6 = por %p1272_p8, %p1271_p7 }
 0x175   : > { %p1267_p9 = pneg %p1266_p0 }
 0x177   : > { %p1274_p11 = pnand %p1273_p6, %p1267_p9 }
 0x179   : > { %1277 = shalt.err (!%p1274_p11)  }
 0x17a   : > { %p2234_p13 = pmov %p2233_p5  ;;  %s472_s6 = sadd.s32 5, %s1875_s8 }
 0x17b   : > { %p2235_p4 = pmov %p2233_p5  ;;  %s702_s0 = scalar_lea.vmem %s1872_s15, 5 [#allocation2] }
 0x17c   : > { %857 = dma.hbm_to_vmem [thread:$0]  (%p2234_p13), %s441_s21, 16, %s1963_s5, %s1906_s7 }
 0x17d   : > { %s861_s29 = scalar_select %p2235_p4, [#allocation5], [#allocation55] }
 0x17e   : > { %p2236_p3 = pmov %p2235_p4  ;;  %s489_s26 = sadd.s32 6, %s1875_s8 }
 0x17f   : > { %s803_s28 = sshll.u32 %s1996_s19, 4  ;;  %s485_s10 = sshll.u32 %s702_s0, 4  ;;  %s486_s10 = int_to_ptr.vmem [resolvable:$true] %s485_s10 }
 0x180   : > { %s2296_s6 = smov (!%p2236_p3, %s472_s6), 0  ;;  %s458_s24 = scalar_lea.hbm %s2180_s4, %s803_s28 }
 0x181   : > { %s2025_s22 = sld [smem:[%s861_s29 + %s2296_s6]]  ;;  %s1278_s30 = scalar_lea.hbm %s458_s24, 16 }
 0x182   : > { %p1279_p10 = scmp.ne.s32.totalorder %s458_s24, %s1278_s30  ;;  %p2237_p12 = pmov %p2236_p3 }
 0x183   : > { %p1283_p5 = scmp.lt.u32.totalorder %s458_s24, %s2180_s4  ;;  %p1284_p0 = scmp.lt.u32.totalorder %s1622_s17, %s1278_s30 }
 0x184   : > { %p1280_p2 = pnand %p1279_p10, %p2237_p12  ;;  %p1286_p7 = scmp.lt.u32.totalorder %s1278_s30, %s458_s24 }
 0x185   : > { %p1285_p9 = por %p1284_p0, %p1283_p5 }
 0x186   : > { %p1281_p1 = pneg %p1280_p2 }
 0x187   : > { %p1287_p8 = por %p1286_p7, %p1285_p9 }
 0x189   : > { %p1288_p6 = pnand %p1287_p8, %p1281_p1 }
 0x18b   : > { %1291 = shalt.err (!%p1288_p6)  }
 0x18c   : > { %s1292_s19 = scalar_lea.vmem %s2015_s11, 16  ;;  %p2238_p13 = pmov %p2236_p3 }
 0x18d   : > { %p1293_p11 = scmp.ne.s32.totalorder %s2015_s11, %s1292_s19  ;;  %p1299_p10 = scmp.lt.s32.totalorder %s2015_s11, %s1634_s13 }
 0x18e   : > { %p1300_p12 = scmp.lt.s32.totalorder %s1637_s16, %s1292_s19 }
 0x18f   : > { %p1294_p4 = pnand %p1293_p11, %p2238_p13 }
 0x190   : > { %p1301_p2 = por %p1300_p12, %p1299_p10 }
 0x191   : > { %p1295_p3 = pneg %p1294_p4 }
 0x193   : > { %p1302_p0 = pnand %p1301_p2, %p1295_p3 }
 0x195   : > { %1305 = shalt.err (!%p1302_p0)  }
 0x196   : > { %p2239_p5 = pmov %p2238_p13  ;;  %s805_s9 = sshll.u32 %s2025_s22, 4 }
 0x197   : > { %s707_s6 = scalar_lea.vmem %s1872_s15, 6 [#allocation2]  ;;  %s475_s28 = scalar_lea.hbm %s2180_s4, %s805_s9 }
 0x198   : > { %860 = dma.hbm_to_vmem [thread:$0]  (%p2239_p5), %s458_s24, 16, %s2015_s11, %s1906_s7 }
 0x199   : > { %p2240_p1 = pmov %p2239_p5  ;;  %s1306_s20 = scalar_lea.hbm %s475_s28, 16 }
 0x19a   : > { %p1307_p7 = scmp.ne.s32.totalorder %s475_s28, %s1306_s20  ;;  %p1311_p13 = scmp.lt.u32.totalorder %s475_s28, %s2180_s4 }
 0x19b   : > { %s864_s27 = scalar_select %p2240_p1, [#allocation5], [#allocation56] }
 0x19c   : > { %p2241_p9 = pmov %p2240_p1  ;;  %p2242_p8 = pmov %p2240_p1 }
 0x19d   : > { %p1312_p4 = scmp.lt.u32.totalorder %s1622_s17, %s1306_s20  ;;  %p1314_p10 = scmp.lt.u32.totalorder %s1306_s20, %s475_s28 }
 0x19e   : > { %s2298_s26 = smov (!%p2241_p9, %s489_s26), 0  ;;  %p1308_p6 = pnand %p1307_p7, %p2242_p8 }
 0x19f   : > { %s2056_s23 = sld [smem:[%s864_s27 + %s2298_s26]]  ;;  %p1313_p3 = por %p1312_p4, %p1311_p13 }
 0x1a0   : > { %p1309_p11 = pneg %p1308_p6 }
 0x1a1   : > { %p1315_p12 = por %p1314_p10, %p1313_p3 }
 0x1a3   : > { %p1316_p2 = pnand %p1315_p12, %p1309_p11 }
 0x1a5   : > { %1319 = shalt.err (!%p1316_p2)  }
 0x1a6   : > { %s1320_s22 = scalar_lea.vmem %s486_s10, 16  ;;  %p2243_p5 = pmov %p2240_p1 }
 0x1a7   : > { %p1321_p0 = scmp.ne.s32.totalorder %s486_s10, %s1320_s22  ;;  %p1327_p7 = scmp.lt.s32.totalorder %s486_s10, %s1634_s13 }
 0x1a8   : > { %p1328_p8 = scmp.lt.s32.totalorder %s1637_s16, %s1320_s22 }
 0x1a9   : > { %p1322_p1 = pnand %p1321_p0, %p2243_p5 }
 0x1aa   : > { %p1329_p6 = por %p1328_p8, %p1327_p7 }
 0x1ab   : > { %p1323_p9 = pneg %p1322_p1 }
 0x1ad   : > { %p1330_p4 = pnand %p1329_p6, %p1323_p9 }
 0x1af   : > { %1333 = shalt.err (!%p1330_p4)  }
 0x1b0   : > { %p2244_p13 = pmov %p2243_p5  ;;  %s502_s26 = sshll.u32 %s707_s6, 4  ;;  %s503_s26 = int_to_ptr.vmem [resolvable:$true] %s502_s26 }
 0x1b1   : > { %s506_s24 = sadd.s32 7, %s1875_s8  ;;  %p2245_p11 = pmov %p2243_p5 }
 0x1b2   : > { %863 = dma.hbm_to_vmem [thread:$0]  (%p2244_p13), %s475_s28, 16, %s486_s10, %s1906_s7 }
 0x1b3   : > { %s867_s5 = scalar_select %p2245_p11, [#allocation5], [#allocation57] }
 0x1b4   : > { %p2246_p3 = pmov %p2243_p5  ;;  %s712_s21 = scalar_lea.vmem %s1872_s15, 7 [#allocation2] }
 0x1b5   : > { %s807_s19 = sshll.u32 %s2056_s23, 4  ;;  %s519_s20 = sshll.u32 %s712_s21, 4  ;;  %s520_s20 = int_to_ptr.vmem [resolvable:$true] %s519_s20 }
 0x1b6   : > { %s2300_s24 = smov (!%p2246_p3, %s506_s24), 0  ;;  %s492_s0 = scalar_lea.hbm %s2180_s4, %s807_s19 }
 0x1b7   : > { %s507_s27 = sld [smem:[%s867_s5 + %s2300_s24]]  ;;  %s1334_s30 = scalar_lea.hbm %s492_s0, 16 }
 0x1b8   : > { %p1335_p10 = scmp.ne.s32.totalorder %s492_s0, %s1334_s30  ;;  %p2247_p12 = pmov %p2246_p3 }
 0x1b9   : > { %p1339_p5 = scmp.lt.u32.totalorder %s492_s0, %s2180_s4  ;;  %p1340_p1 = scmp.lt.u32.totalorder %s1622_s17, %s1334_s30 }
 0x1ba   : > { %p1336_p2 = pnand %p1335_p10, %p2247_p12  ;;  %p1342_p7 = scmp.lt.u32.totalorder %s1334_s30, %s492_s0 }
 0x1bb   : > { %p1341_p9 = por %p1340_p1, %p1339_p5 }
 0x1bc   : > { %p1337_p0 = pneg %p1336_p2 }
 0x1bd   : > { %p1343_p8 = por %p1342_p7, %p1341_p9 }
 0x1bf   : > { %p1344_p6 = pnand %p1343_p8, %p1337_p0 }
 0x1c1   : > { %1347 = shalt.err (!%p1344_p6)  }
 0x1c2   : > { %s1348_s15 = scalar_lea.vmem %s503_s26, 16  ;;  %p2248_p13 = pmov %p2246_p3 }
 0x1c3   : > { %p1349_p4 = scmp.ne.s32.totalorder %s503_s26, %s1348_s15  ;;  %p1355_p10 = scmp.lt.s32.totalorder %s503_s26, %s1634_s13 }
 0x1c4   : > { %p1356_p12 = scmp.lt.s32.totalorder %s1637_s16, %s1348_s15 }
 0x1c5   : > { %p1350_p11 = pnand %p1349_p4, %p2248_p13 }
 0x1c6   : > { %p1357_p2 = por %p1356_p12, %p1355_p10 }
 0x1c7   : > { %p1351_p3 = pneg %p1350_p11 }
 0x1c9   : > { %p1358_p1 = pnand %p1357_p2, %p1351_p3 }
 0x1cb   : > { %1361 = shalt.err (!%p1358_p1)  }
 0x1cc   : > { %p2249_p5 = pmov %p2248_p13  ;;  %s809_s6 = sshll.u32 %s507_s27, 4 }
 0x1cd   : > { %s509_s11 = scalar_lea.hbm %s2180_s4, %s809_s6 }
 0x1ce   : > { %866 = dma.hbm_to_vmem [thread:$0]  (%p2249_p5), %s492_s0, 16, %s503_s26, %s1906_s7 }
 0x1cf   : > { %s1362_s22 = scalar_lea.hbm %s509_s11, 16  ;;  %p2250_p9 = pmov %p2249_p5 }
 0x1d0   : > { %p1363_p0 = scmp.ne.s32.totalorder %s509_s11, %s1362_s22  ;;  %p1367_p6 = scmp.lt.u32.totalorder %s509_s11, %s2180_s4 }
 0x1d1   : > { %p1368_p4 = scmp.lt.u32.totalorder %s1622_s17, %s1362_s22  ;;  %p1370_p11 = scmp.lt.u32.totalorder %s1362_s22, %s509_s11 }
 0x1d2   : > { %p1364_p7 = pnand %p1363_p0, %p2250_p9 }
 0x1d3   : > { %p1369_p13 = por %p1368_p4, %p1367_p6 }
 0x1d4   : > { %p1365_p8 = pneg %p1364_p7 }
 0x1d5   : > { %p1371_p3 = por %p1370_p11, %p1369_p13 }
 0x1d7   : > { %p1372_p10 = pnand %p1371_p3, %p1365_p8 }
 0x1d9   : > { %1375 = shalt.err (!%p1372_p10)  }
 0x1da   : > { %s1376_s26 = scalar_lea.vmem %s520_s20, 16  ;;  %p2251_p2 = pmov %p2249_p5 }
 0x1db   : > { %p1377_p12 = scmp.ne.s32.totalorder %s520_s20, %s1376_s26  ;;  %p1383_p0 = scmp.lt.s32.totalorder %s520_s20, %s1634_s13 }
 0x1dc   : > { %p1384_p9 = scmp.lt.s32.totalorder %s1637_s16, %s1376_s26 }
 0x1dd   : > { %p1378_p1 = pnand %p1377_p12, %p2251_p2 }
 0x1de   : > { %p1385_p7 = por %p1384_p9, %p1383_p0 }
 0x1df   : > { %p1379_p5 = pneg %p1378_p1 }
 0x1e1   : > { %p1386_p4 = pnand %p1385_p7, %p1379_p5 }
 0x1e3   : > { %1389 = shalt.err (!%p1386_p4)  }
 0x1e4   : > { %p2252_p6 = pmov %p2251_p2  ;;  %v811_v3 = vld [vmem:[%s2179_s3] ss:$0 sm:$0xff]  ;;  %v812_v4 = vld [vmem:[%s2179_s3 + $0x1] ss:$0 sm:$0xff]  ;;  %v530_v6 = vpop.permute.xlu0 %529  ;;  %s204_s16 = scalar_lea.vmem [#allocation6], %s1570_s12 }
 0x1e5   : > { %v541_v5 = vld [vmem:[%s2178_s2] sm:$0xff]  ;;  %vm531_vm1 = vcmp.eq.s32.totalorder %v530_v6, 1 }
 0x1e6   : > { %869 = dma.hbm_to_vmem [thread:$0]  (%p2252_p6), %s509_s11, 16, %s520_s20, %s1906_s7  ;;  %v540_v7 = vsel %vm531_vm1, %v811_v3, %v812_v4 }
 0x1e7   : > { %v542_v8 = vadd.f32 %v541_v5, %v540_v7 }
 0x1e8   : > { %1444 = dma.done.wait %s1613_s1, 128 }
 0x1e9   : > { %1445 = vsyncadd %s1613_s1, 4294967168  ;;  %s2253_s7 = sld [smem:[#allocation62_spill]]  ;;  %s2254_s18 = sld [smem:[#allocation67_spill]]  ;;  %v563_v9 = vld [vmem:[%s1591_s14] sm:$0xff] }
 0x1ea   : > { %s815_s29 = sshll.u32 %s1464_s25, 7  ;;  %s581_s0 = sshll.u32 %s204_s16, 4  ;;  %v564_v10 = vadd.f32 %v563_v9, %v542_v8  ;;  %s2129_s0 = int_to_ptr.vmem [resolvable:$true] %s581_s0 }
 0x1eb   : > { %s2255_s10 = sld [smem:[#allocation71_spill]]  ;;  %s1390_s15 = scalar_lea.vmem %s2129_s0, 128 }
 0x1ec   : > { %565 = vst [vmem:[%s204_s16] sm:$0xff] %v564_v10  ;;  %p1391_p8 = scmp.ne.s32.totalorder %s2129_s0, %s1390_s15  ;;  %s1477_s25 = smov [#allocation6]  }
 0x1ed   : > { %s1394_s14 = sshll.u32 %s1477_s25, 4  ;;  %s1395_s14 = int_to_ptr.vmem [resolvable:$false] %s1394_s14 }
 0x1ee   : > { %s1396_s6 = scalar_lea.vmem %s1395_s14, 256  ;;  %p1397_p10 = scmp.lt.s32.totalorder %s2129_s0, %s1395_s14 }
 0x1ef   : > { %s2256_s1 = sand.u32 1, %s2253_s7   ;;  %p2257_p13 = scmp.ne.s32.totalorder %s2254_s18, 0 }
 0x1f0   : > { %s567_s12 = scalar_lea.sflag [#allocation7], %s2256_s1  ;;  %p1398_p12 = scmp.lt.s32.totalorder %s1396_s6, %s1390_s15 }
 0x1f1   : > { %s2127_s8 = scalar_lea.hbm %s2255_s10, %s815_s29  ;;  %p1392_p11 = pnand %p1391_p8, %p2257_p13 }
 0x1f2   : > { %p1399_p2 = por %p1398_p12, %p1397_p10 }
 0x1f3   : > { %p1393_p3 = pneg %p1392_p11 }
 0x1f5   : > { %p1400_p1 = pnand %p1399_p2, %p1393_p3 }
 0x1f7   : > { %1403 = shalt.err (!%p1400_p1)
}
 0x1f8   : > { %s1404_s28 = scalar_lea.hbm %s2127_s8, 128  ;;  %s1408_s22 = scalar_lea.hbm %s2255_s10, 256 }
 0x1f9   : > { %p1405_p5 = scmp.ne.s32.totalorder %s2127_s8, %s1404_s28  ;;  %p1409_p7 = scmp.lt.u32.totalorder %s2127_s8, %s2255_s10 }
 0x1fa   : > { %p1410_p4 = scmp.lt.u32.totalorder %s1408_s22, %s1404_s28  ;;  %p1412_p8 = scmp.lt.u32.totalorder %s1404_s28, %s2127_s8 }
 0x1fb   : > { %p1406_p0 = pnand %p1405_p5, %p2257_p13 }
 0x1fc   : > { %p1411_p6 = por %p1410_p4, %p1409_p7 }
 0x1fd   : > { %p1407_p9 = pneg %p1406_p0 }
 0x1fe   : > { %p1413_p11 = por %p1412_p8, %p1411_p6 }
 0x200   : > { %p1414_p3 = pnand %p1413_p11, %p1407_p9 }
 0x202   : > { %1417 = shalt.err (!%p1414_p3)
}
 0x203   : > { %870 = dma.vmem_to_hbm [thread:$0]  (%p2257_p13), %s2129_s0, 128, %s2127_s8, %s567_s12  }
 0x204 PF: > { %s2258_s26 = sld [smem:[#allocation65_spill]]  ;;  %s2259_s17 = sld [smem:[#allocation61_spill]] }
 0x205   : > { %s2260_s21 = sld [smem:[#allocation68_spill]] }
 0x20a   : > { %p878_p10 = scmp.ge.s32.totalorder %s2258_s26, 2  ;;  %s593_s19 = sand.u32 1, %s2259_s17  }
 0x20b   : > { %p2261_p12 = scmp.ne.s32.totalorder %s2260_s21, 0  ;;  %s594_s27 = scalar_lea.sflag [#allocation7], %s593_s19 }
 0x20d   : > { %p873_p2 = pnand %p878_p10, %p2261_p12 }
 0x20f   : > { %1447 = dma.done.wait (!%p873_p2), %s594_s27, 128  }
 0x210   : > { %1449 = vsyncadd (!%p873_p2), %s594_s27, 4294967168  ;;  %s24_s27 = sadd.s32 1, %s2258_s26   ;;  %s2262_s23 = sld [smem:[#allocation62_spill]] }
 0x211   : > { %p21_p1 = scmp.ge.s32.totalorder %s24_s27, 4   ;;  %s2263_s24 = sld [smem:[#allocation63_spill]] }
 0x212   : > { %s2264_s0 = sld [smem:[#allocation69_spill]]  ;;  %s2265_s25 = sld [smem:[#allocation64_spill]] }
 0x213   : > { %s2266_s26 = sld [smem:[#allocation66_spill]]  ;;  %23 = sbr.rel (!%p21_p1) target bundleno = 20 (0x14), region = 179 }
 0x21a   :  { %599 = vsyncpa [#allocation7], 1 }
 0x21b   :  { %601 = vsyncpa [#allocation7 + $0x1], 1 }
 0x21c   :  { %602 = vsyncmov [#allocation3] }
 0x21f   :  { %s603_s9 = vpop.sfrf %602 }
 0x220   :  { %p818_p13 = scmp.ne.s32.totalorder %s603_s9, 0 }
 0x222   :  { %607 = shalt.err (%p818_p13)  }
 0x223   :  { %609 = vsyncmov [#allocation3 + $0x1] }
 0x226   :  { %s610_s13 = vpop.sfrf %609 }
 0x227   :  { %p819_p5 = scmp.ne.s32.totalorder %s610_s13, 0 }
 0x229   :  { %614 = shalt.err (%p819_p5)  }

</bundles_post_ra>
